<compile_context>
chip_gen: v5e
topology: v5e:2x2
jax: 0.10.0
libtpu: 0.0.40
codegen_flags: <defaults>
</compile_context>

<pallas_src>
import math

import jax
import jax.numpy as jnp
from jax.experimental import pallas as pl
from jax.experimental.pallas import tpu as pltpu

# ---------------- static problem sizes (small, consistent with the module) ---
B = 2            # batch
SQ = 8           # query length (candidate spans)
SKV = 4          # key/value length (aspect spans)
HIDDEN = 32      # hidden_size == bert_feature_dim
HEADS = 4        # num_attention_heads
HEAD_DIM = HIDDEN // HEADS
INTERMEDIATE = 64
NUM_CLASSES = 4                      # len(sentiment2id)
NUM_BLOCKS = 3                       # block_num -> max(1, block_num-1) = 2 layers
NUM_LAYERS = max(1, NUM_BLOCKS - 1)
LN_EPS = 1e-12
NEG_INF = -1_000_000_000.0

BQ = B * SQ                          # 16 query rows (batch folded into sublanes)
BHK = B * HEADS * SKV                # 32 key lanes (batch+head folded into lanes)
HK = HEADS * SKV                     # 16 lanes per batch

# ---- packed-slab lane/row offsets (compile-time constants) -------------------
OFF_WQ = 0                                   # Wq_l at 32*l
OFF_WO = OFF_WQ + HIDDEN * NUM_LAYERS        # 64:  Wo_l at OFF_WO + 32*l
OFF_WI = OFF_WO + HIDDEN * NUM_LAYERS        # 128: Wi_l at OFF_WI + 64*l
OFF_WC = OFF_WI + INTERMEDIATE * NUM_LAYERS  # 256: classifier weight (padded to 16)
OFF_GSUM = OFF_WC + HK                       # 272: per-head group-sum matrix [32,32]
W_SLAB_LANES = OFF_GSUM + BHK                # 304

OFF_WKVW = 0                                 # [Wk0|Wv0|Wk1|Wv1] -> 128 lanes
OFF_HMASK = 2 * HIDDEN * NUM_LAYERS          # 128: head block-diag mask [32,128]
WKV_SLAB_LANES = OFF_HMASK + 2 * HIDDEN * NUM_LAYERS  # 256

ROW_BKV = 0                                  # [bk0|bv0|bk1|bv1]
ROW_A = lambda l: 1 + 3 * l                  # [bq | bo | ln1_g | ln1_b]
ROW_B = lambda l: 2 + 3 * l                  # [bi(64) | b2 | ln2_g]
ROW_C = lambda l: 3 + 3 * l                  # [ln2_b | pad]
ROW_CLS = 1 + 3 * NUM_LAYERS                 # 7: [bc(padded to 16) | pad]


def _layernorm(x, g, b, eps):
    mu = jnp.mean(x, axis=-1, keepdims=True)
    var = jnp.mean(jnp.square(x - mu), axis=-1, keepdims=True)
    return (x - mu) * jax.lax.rsqrt(var + eps) * g + b


# --------------------- fully fused Step_2_forward kernel ---------------------
def fused_step2_kernel(x_ref, enc_ref, mask_ref, wkv_ref, w_ref, w2_ref, vec_ref,
                       out_ref):
    f32 = jnp.float32
    x = x_ref[...]            # [16, 32]   queries, batch folded into sublanes
    enc_rep = enc_ref[...]    # [32, 32]   encoder states replicated per head
    addmask = mask_ref[...]   # [16, 32]   (~mask)*-1e9 query rows + -1e9 cross-batch
    vec = vec_ref[...]        # [8, 128]   all biases / LN params (one vreg)

    # K/V for BOTH layers in ONE matmul; mask to (batch, head) block-diagonal.
    # kv_all lanes: [kbd0 | vbd0 | kbd1 | vbd1]
    kv_all = (jnp.dot(enc_rep, wkv_ref[:, OFF_WKVW:OFF_WKVW + 2 * HIDDEN * NUM_LAYERS],
                      preferred_element_type=f32)
              + vec[ROW_BKV:ROW_BKV + 1, :]) \
        * wkv_ref[:, OFF_HMASK:OFF_HMASK + 2 * HIDDEN * NUM_LAYERS]      # [32, 128]

    gsum = w_ref[:, OFF_GSUM:OFF_GSUM + BHK]     # [32, 32] per-head group-sum

    scale = 1.0 / math.sqrt(HEAD_DIM)
    hidden = x
    p = None

    for l in range(NUM_LAYERS):                  # static unroll (2 layers)
        ra, rb, rc = ROW_A(l), ROW_B(l), ROW_C(l)
        wq = w_ref[:, OFF_WQ + HIDDEN * l:OFF_WQ + HIDDEN * (l + 1)]
        wo = w_ref[:, OFF_WO + HIDDEN * l:OFF_WO + HIDDEN * (l + 1)]
        wi = w_ref[:, OFF_WI + INTERMEDIATE * l:OFF_WI + INTERMEDIATE * (l + 1)]
        w2 = w2_ref[:, HIDDEN * l:HIDDEN * (l + 1)]
        bq, bo = vec[ra:ra + 1, 0:32], vec[ra:ra + 1, 32:64]
        g1, be1 = vec[ra:ra + 1, 64:96], vec[ra:ra + 1, 96:128]
        bi, b2, g2 = vec[rb:rb + 1, 0:64], vec[rb:rb + 1, 64:96], vec[rb:rb + 1, 96:128]
        be2 = vec[rc:rc + 1, 0:32]

        kbd = kv_all[:, 2 * HIDDEN * l:2 * HIDDEN * l + HIDDEN]           # [32, 32]
        vbd = kv_all[:, 2 * HIDDEN * l + HIDDEN:2 * HIDDEN * (l + 1)]     # [32, 32]

        # All heads & all batches in ONE matmul per stage.
        q = jnp.dot(hidden, wq, preferred_element_type=f32) + bq          # [16, 32]
        s = jax.lax.dot_general(q, kbd, (((1,), (1,)), ((), ())),
                                preferred_element_type=f32)               # [16, 32]
        s = s * scale + addmask
        s = s - jnp.max(s, axis=-1, keepdims=True)
        e = jnp.exp(s)                          # cross-batch lanes are exactly 0
        denom = jnp.dot(e, gsum, preferred_element_type=f32)              # [16, 32]
        p = e * pl.reciprocal(denom, approx=True)                         # softmax
        ctx = jnp.dot(p, vbd, preferred_element_type=f32)                 # [16, 32]

        # self-output: dense + dropout(identity) + LayerNorm(residual)
        att = _layernorm(
            jnp.dot(ctx, wo, preferred_element_type=f32) + bo + hidden, g1, be1, LN_EPS)
        # intermediate: dense + GELU (tanh approximation)
        inter = jax.nn.gelu(
            jnp.dot(att, wi, preferred_element_type=f32) + bi, approximate=True)
        # output: dense + dropout(identity) + LayerNorm(residual)
        hidden = _layernorm(
            jnp.dot(inter, w2, preferred_element_type=f32) + b2 + att, g2, be2, LN_EPS)

    # classifier logits padded to 16 lanes; attention probs compacted to the
    # own-batch 16 lanes (cross-batch lanes are exactly zero, so a plain add works).
    logits16 = (jnp.dot(hidden, w_ref[:, OFF_WC:OFF_WC + HK],
                        preferred_element_type=f32)
                + vec[ROW_CLS:ROW_CLS + 1, 0:HK])                         # [16, 16]
    attn16 = p[:, 0:HK] + p[:, HK:2 * HK]                                 # [16, 16]
    out_ref[...] = jnp.concatenate([attn16, logits16], axis=-1)           # [16, 32]


# ------------------------- one-time parameter packing ------------------------
def pack_step2_params(layer_params, wc, bc):
    """Pack all parameters + compile-time constant selectors into 4 lane-dense slabs."""
    # layer_params[l] = (wq, bq, wk, bk, wv, bv, wo, bo, g1, be1, wi, bi, w2, b2, g2, be2)
    # -- wkv slab: [Wk0|Wv0|Wk1|Wv1 | head block-diag mask] ---------------------
    wkv_w = jnp.concatenate(
        [jnp.concatenate([lp[2], lp[4]], axis=1) for lp in layer_params], axis=1)
    r = jnp.arange(BHK)
    head_r = (r // SKV) % HEADS
    c = jnp.arange(2 * HIDDEN * NUM_LAYERS)
    head_c = (c % HIDDEN) // HEAD_DIM
    headmask = (head_r[:, None] == head_c[None, :]).astype(jnp.float32)   # [32, 128]
    wkv_slab = jnp.concatenate([wkv_w, headmask], axis=1)                 # [32, 256]

    # -- main 32-row weight slab: [Wq0|Wq1|Wo0|Wo1|Wi0|Wi1|Wc_pad|gsum] ---------
    hg = (jnp.arange(BHK) // SKV) % HEADS
    gsum = (hg[:, None] == hg[None, :]).astype(jnp.float32)               # [32, 32]
    wc_pad = jnp.pad(wc, ((0, 0), (0, HK - NUM_CLASSES)))                 # [32, 16]
    w_slab = jnp.concatenate(
        [layer_params[0][0], layer_params[1][0],      # Wq
         layer_params[0][6], layer_params[1][6],      # Wo
         layer_params[0][10], layer_params[1][10],    # Wi
         wc_pad, gsum], axis=1)                       # [32, 304]

    # -- 64-row weight slab: [W2_0 | W2_1] --------------------------------------
    w2_slab = jnp.concatenate([layer_params[0][12], layer_params[1][12]], axis=1)

    # -- vector slab: all biases / LN params in one (8,128) tile ----------------
    def row128(*parts):
        v = jnp.concatenate([jnp.asarray(pt).reshape(-1) for pt in parts])
        return jnp.pad(v, (0, 128 - v.shape[0]))

    rows = [row128(layer_params[0][3], layer_params[0][5],
                   layer_params[1][3], layer_params[1][5])]               # bkv
    for lp in layer_params:
        (_, bq, _, _, _, _, _, bo, g1, be1, _, bi, _, b2, g2, be2) = lp
        rows.append(row128(bq, bo, g1, be1))
        rows.append(row128(bi, b2, g2))
        rows.append(row128(be2))
    rows.append(row128(jnp.pad(bc, (0, HK - NUM_CLASSES))))
    vec_slab = jnp.stack(rows)                                            # [8, 128]

    return wkv_slab, w_slab, w2_slab, vec_slab


# ----------------------------- full Step_2_forward ---------------------------
@jax.jit
def step2_forward(aspect_spans_embedding, aspect_span_mask, spans_aspect_tensor,
                  wkv_slab, w_slab, w2_slab, vec_slab):
    x2d = aspect_spans_embedding.reshape(BQ, HIDDEN)
    # encoder states replicated per head -> rows of the (batch, head) block-diag K'/V'
    enc_rep = jnp.broadcast_to(spans_aspect_tensor[:, None, :, :],
                               (B, HEADS, SKV, HIDDEN)).reshape(BHK, HIDDEN)
    # additive mask: (~mask)*-1e9 on query rows (PyTorch semantics: uniform softmax
    # on padded rows) + -1e9 on cross-batch key lanes (from the batch fold).
    qneg = (1.0 - aspect_span_mask.astype(jnp.float32)).reshape(BQ, 1) * NEG_INF
    row_b = (jnp.arange(BQ, dtype=jnp.int32) // SQ)[:, None]
    col_b = (jnp.arange(BHK, dtype=jnp.int32) // HK)[None, :]
    addmask = qneg + jnp.where(row_b == col_b, 0.0, NEG_INF)              # [16, 32]

    out = pl.pallas_call(
        fused_step2_kernel,
        out_shape=jax.ShapeDtypeStruct((BQ, 2 * HK), jnp.float32),
        in_specs=[pl.BlockSpec(memory_space=pltpu.MemorySpace.VMEM)] * 7,
        out_specs=pl.BlockSpec(memory_space=pltpu.MemorySpace.VMEM),
    )(x2d, enc_rep, addmask, wkv_slab, w_slab, w2_slab, vec_slab)

    attn = out[:, :HK].reshape(B, SQ, HEADS, SKV).transpose(0, 2, 1, 3)
    logits = out[:, HK:HK + NUM_CLASSES].reshape(B, SQ, NUM_CLASSES)
    return logits, attn


# ----------------------------------- main -------------------------------------
if __name__ == "__main__":
    keys = iter(jax.random.split(jax.random.PRNGKey(0), 64))

    def dense_params(fan_in, fan_out):
        lim = 1.0 / math.sqrt(fan_in)
        w = jax.random.uniform(next(keys), (fan_in, fan_out), jnp.float32, -lim, lim)
        b = jax.random.uniform(next(keys), (fan_out,), jnp.float32, -lim, lim)
        return w, b

    layer_params = []
    for _ in range(NUM_LAYERS):
        wq, bq = dense_params(HIDDEN, HIDDEN)
        wk, bk = dense_params(HIDDEN, HIDDEN)
        wv, bv = dense_params(HIDDEN, HIDDEN)
        wo, bo = dense_params(HIDDEN, HIDDEN)
        g1 = jnp.ones((HIDDEN,), jnp.float32)
        be1 = jnp.zeros((HIDDEN,), jnp.float32)
        wi, bi = dense_params(HIDDEN, INTERMEDIATE)
        w2, b2 = dense_params(INTERMEDIATE, HIDDEN)
        g2 = jnp.ones((HIDDEN,), jnp.float32)
        be2 = jnp.zeros((HIDDEN,), jnp.float32)
        layer_params.append((wq, bq, wk, bk, wv, bv, wo, bo, g1, be1,
                             wi, bi, w2, b2, g2, be2))
    wc, bc = dense_params(HIDDEN, NUM_CLASSES)

    # One-time packing (done outside the per-call jitted forward).
    wkv_slab, w_slab, w2_slab, vec_slab = pack_step2_params(layer_params, wc, bc)

    xk, ek = jax.random.split(jax.random.PRNGKey(0))
    aspect_spans_embedding = jax.random.normal(xk, (B, SQ, HIDDEN), jnp.float32)
    spans_aspect_tensor = jax.random.normal(ek, (B, SKV, HIDDEN), jnp.float32)
    aspect_span_mask = jnp.concatenate(
        [jnp.ones((B, SQ - 2), jnp.bool_), jnp.zeros((B, 2), jnp.bool_)],
        axis=1)                                            # last 2 spans padded

    logits, attn = step2_forward(aspect_spans_embedding, aspect_span_mask,
                                 spans_aspect_tensor,
                                 wkv_slab, w_slab, w2_slab, vec_slab)
    jax.block_until_ready((logits, attn))
    assert logits.shape == (B, SQ, NUM_CLASSES)
    assert attn.shape == (B, HEADS, SQ, SKV)
    assert bool(jnp.all(jnp.isfinite(logits))) and bool(jnp.all(jnp.isfinite(attn)))
    print("KERNEL_OK")
</pallas_src>

<mosaic_0001>
module attributes {stable_mosaic.version = 11 : i64} {
  func.func @fused_step2_kernel(%arg0: memref<16x32xf32, #tpu.memory_space<vmem>>, %arg1: memref<32x32xf32, #tpu.memory_space<vmem>>, %arg2: memref<16x32xf32, #tpu.memory_space<vmem>>, %arg3: memref<32x256xf32, #tpu.memory_space<vmem>>, %arg4: memref<32x304xf32, #tpu.memory_space<vmem>>, %arg5: memref<64x64xf32, #tpu.memory_space<vmem>>, %arg6: memref<8x128xf32, #tpu.memory_space<vmem>>, %arg7: memref<16x32xf32, #tpu.memory_space<vmem>>) attributes {dimension_semantics = [], scalar_prefetch = 0 : i64, scratch_operands = 0 : i64, tpu.core_type = #tpu.core_type<tc>} {
    %c0 = arith.constant 0 : index
    %c0_0 = arith.constant 0 : index
    %0 = vector.load %arg0[%c0, %c0_0] : memref<16x32xf32, #tpu.memory_space<vmem>>, vector<16x32xf32>
    %c0_1 = arith.constant 0 : index
    %c0_2 = arith.constant 0 : index
    %1 = vector.load %arg1[%c0_1, %c0_2] : memref<32x32xf32, #tpu.memory_space<vmem>>, vector<32x32xf32>
    %c0_3 = arith.constant 0 : index
    %c0_4 = arith.constant 0 : index
    %2 = vector.load %arg2[%c0_3, %c0_4] : memref<16x32xf32, #tpu.memory_space<vmem>>, vector<16x32xf32>
    %c0_5 = arith.constant 0 : index
    %c0_6 = arith.constant 0 : index
    %3 = vector.load %arg6[%c0_5, %c0_6] : memref<8x128xf32, #tpu.memory_space<vmem>>, vector<8x128xf32>
    %c0_7 = arith.constant 0 : index
    %c0_8 = arith.constant 0 : index
    %4 = vector.load %arg3[%c0_7, %c0_8] : memref<32x256xf32, #tpu.memory_space<vmem>>, vector<32x128xf32>
    %cst = arith.constant dense<0.000000e+00> : vector<32x128xf32>
    %5 = tpu.matmul %1, %4, %cst {dimension_numbers = #tpu.dot_dimension_numbers<[1], [0], [0], [1], [0, 0, 1, 1], [], []>} : vector<32x32xf32>, vector<32x128xf32>, vector<32x128xf32> -> vector<32x128xf32>
    %6 = vector.extract_strided_slice %3 {offsets = [0, 0], sizes = [1, 128], strides = [1, 1]} : vector<8x128xf32> to vector<1x128xf32>
    %7 = vector.broadcast %6 : vector<1x128xf32> to vector<32x128xf32>
    %8 = arith.addf %5, %7 : vector<32x128xf32>
    %c0_9 = arith.constant 0 : index
    %c128 = arith.constant 128 : index
    %9 = vector.load %arg3[%c0_9, %c128] : memref<32x256xf32, #tpu.memory_space<vmem>>, vector<32x128xf32>
    %10 = arith.mulf %8, %9 : vector<32x128xf32>
    %c0_10 = arith.constant 0 : index
    %c272 = arith.constant 272 : index
    %11 = vector.load %arg4[%c0_10, %c272] : memref<32x304xf32, #tpu.memory_space<vmem>>, vector<32x32xf32>
    %c0_11 = arith.constant 0 : index
    %c0_12 = arith.constant 0 : index
    %12 = vector.load %arg4[%c0_11, %c0_12] : memref<32x304xf32, #tpu.memory_space<vmem>>, vector<32x32xf32>
    %c0_13 = arith.constant 0 : index
    %c64 = arith.constant 64 : index
    %13 = vector.load %arg4[%c0_13, %c64] : memref<32x304xf32, #tpu.memory_space<vmem>>, vector<32x32xf32>
    %c0_14 = arith.constant 0 : index
    %c128_15 = arith.constant 128 : index
    %14 = vector.load %arg4[%c0_14, %c128_15] : memref<32x304xf32, #tpu.memory_space<vmem>>, vector<32x64xf32>
    %c0_16 = arith.constant 0 : index
    %c0_17 = arith.constant 0 : index
    %15 = vector.load %arg5[%c0_16, %c0_17] : memref<64x64xf32, #tpu.memory_space<vmem>>, vector<64x32xf32>
    %16 = vector.extract_strided_slice %3 {offsets = [1, 0], sizes = [1, 32], strides = [1, 1]} : vector<8x128xf32> to vector<1x32xf32>
    %17 = vector.extract_strided_slice %3 {offsets = [1, 32], sizes = [1, 32], strides = [1, 1]} : vector<8x128xf32> to vector<1x32xf32>
    %18 = vector.extract_strided_slice %3 {offsets = [1, 64], sizes = [1, 32], strides = [1, 1]} : vector<8x128xf32> to vector<1x32xf32>
    %19 = vector.extract_strided_slice %3 {offsets = [1, 96], sizes = [1, 32], strides = [1, 1]} : vector<8x128xf32> to vector<1x32xf32>
    %20 = vector.extract_strided_slice %3 {offsets = [2, 0], sizes = [1, 64], strides = [1, 1]} : vector<8x128xf32> to vector<1x64xf32>
    %21 = vector.extract_strided_slice %3 {offsets = [2, 64], sizes = [1, 32], strides = [1, 1]} : vector<8x128xf32> to vector<1x32xf32>
    %22 = vector.extract_strided_slice %3 {offsets = [2, 96], sizes = [1, 32], strides = [1, 1]} : vector<8x128xf32> to vector<1x32xf32>
    %23 = vector.extract_strided_slice %3 {offsets = [3, 0], sizes = [1, 32], strides = [1, 1]} : vector<8x128xf32> to vector<1x32xf32>
    %24 = vector.extract_strided_slice %10 {offsets = [0, 0], sizes = [32, 32], strides = [1, 1]} : vector<32x128xf32> to vector<32x32xf32>
    %25 = vector.extract_strided_slice %10 {offsets = [0, 32], sizes = [32, 32], strides = [1, 1]} : vector<32x128xf32> to vector<32x32xf32>
    %cst_18 = arith.constant dense<0.000000e+00> : vector<16x32xf32>
    %26 = tpu.matmul %0, %12, %cst_18 {dimension_numbers = #tpu.dot_dimension_numbers<[1], [0], [0], [1], [0, 0, 1, 1], [], []>} : vector<16x32xf32>, vector<32x32xf32>, vector<16x32xf32> -> vector<16x32xf32>
    %27 = vector.broadcast %16 : vector<1x32xf32> to vector<16x32xf32>
    %28 = arith.addf %26, %27 : vector<16x32xf32>
    %cst_19 = arith.constant dense<0.000000e+00> : vector<16x32xf32>
    %29 = tpu.matmul %28, %24, %cst_19 {dimension_numbers = #tpu.dot_dimension_numbers<[1], [1], [0], [0], [0, 0, 1, 0], [], []>} : vector<16x32xf32>, vector<32x32xf32>, vector<16x32xf32> -> vector<16x32xf32>
    %cst_20 = arith.constant 0.353553385 : f32
    %30 = vector.broadcast %cst_20 : f32 to vector<16x32xf32>
    %31 = arith.mulf %29, %30 : vector<16x32xf32>
    %32 = arith.addf %31, %2 : vector<16x32xf32>
    %cst_21 = arith.constant dense<0xFF800000> : vector<16xf32>
    %33 = vector.multi_reduction <maximumf>, %32, %cst_21 [1] : vector<16x32xf32> to vector<16xf32>
    %34 = vector.shape_cast %33 : vector<16xf32> to vector<16x1xf32>
    %35 = vector.broadcast %34 : vector<16x1xf32> to vector<16x32xf32>
    %36 = arith.subf %32, %35 : vector<16x32xf32>
    %37 = math.exp %36 : vector<16x32xf32>
    %cst_22 = arith.constant dense<0.000000e+00> : vector<16x32xf32>
    %38 = tpu.matmul %37, %11, %cst_22 {dimension_numbers = #tpu.dot_dimension_numbers<[1], [0], [0], [1], [0, 0, 1, 1], [], []>} : vector<16x32xf32>, vector<32x32xf32>, vector<16x32xf32> -> vector<16x32xf32>
    %39 = tpu.reciprocal %38 {approx = true} : vector<16x32xf32> -> vector<16x32xf32>
    %40 = arith.mulf %37, %39 : vector<16x32xf32>
    %cst_23 = arith.constant dense<0.000000e+00> : vector<16x32xf32>
    %41 = tpu.matmul %40, %25, %cst_23 {dimension_numbers = #tpu.dot_dimension_numbers<[1], [0], [0], [1], [0, 0, 1, 1], [], []>} : vector<16x32xf32>, vector<32x32xf32>, vector<16x32xf32> -> vector<16x32xf32>
    %cst_24 = arith.constant dense<0.000000e+00> : vector<16x32xf32>
    %42 = tpu.matmul %41, %13, %cst_24 {dimension_numbers = #tpu.dot_dimension_numbers<[1], [0], [0], [1], [0, 0, 1, 1], [], []>} : vector<16x32xf32>, vector<32x32xf32>, vector<16x32xf32> -> vector<16x32xf32>
    %43 = vector.broadcast %17 : vector<1x32xf32> to vector<16x32xf32>
    %44 = arith.addf %42, %43 : vector<16x32xf32>
    %45 = arith.addf %44, %0 : vector<16x32xf32>
    %cst_25 = arith.constant dense<0.000000e+00> : vector<16xf32>
    %46 = vector.multi_reduction <add>, %45, %cst_25 [1] : vector<16x32xf32> to vector<16xf32>
    %47 = vector.shape_cast %46 : vector<16xf32> to vector<16x1xf32>
    %cst_26 = arith.constant 3.200000e+01 : f32
    %48 = vector.broadcast %cst_26 : f32 to vector<16x1xf32>
    %49 = arith.divf %47, %48 : vector<16x1xf32>
    %50 = vector.broadcast %49 : vector<16x1xf32> to vector<16x32xf32>
    %51 = arith.subf %45, %50 : vector<16x32xf32>
    %52 = arith.mulf %51, %51 : vector<16x32xf32>
    %cst_27 = arith.constant dense<0.000000e+00> : vector<16xf32>
    %53 = vector.multi_reduction <add>, %52, %cst_27 [1] : vector<16x32xf32> to vector<16xf32>
    %54 = vector.shape_cast %53 : vector<16xf32> to vector<16x1xf32>
    %cst_28 = arith.constant 3.200000e+01 : f32
    %55 = vector.broadcast %cst_28 : f32 to vector<16x1xf32>
    %56 = arith.divf %54, %55 : vector<16x1xf32>
    %57 = vector.broadcast %49 : vector<16x1xf32> to vector<16x32xf32>
    %58 = arith.subf %45, %57 : vector<16x32xf32>
    %cst_29 = arith.constant 9.99999996E-13 : f32
    %59 = vector.broadcast %cst_29 : f32 to vector<16x1xf32>
    %60 = arith.addf %56, %59 : vector<16x1xf32>
    %61 = math.rsqrt %60 : vector<16x1xf32>
    %62 = vector.broadcast %61 : vector<16x1xf32> to vector<16x32xf32>
    %63 = arith.mulf %58, %62 : vector<16x32xf32>
    %64 = vector.broadcast %18 : vector<1x32xf32> to vector<16x32xf32>
    %65 = arith.mulf %63, %64 : vector<16x32xf32>
    %66 = vector.broadcast %19 : vector<1x32xf32> to vector<16x32xf32>
    %67 = arith.addf %65, %66 : vector<16x32xf32>
    %cst_30 = arith.constant dense<0.000000e+00> : vector<16x64xf32>
    %68 = tpu.matmul %67, %14, %cst_30 {dimension_numbers = #tpu.dot_dimension_numbers<[1], [0], [0], [1], [0, 0, 1, 1], [], []>} : vector<16x32xf32>, vector<32x64xf32>, vector<16x64xf32> -> vector<16x64xf32>
    %69 = vector.broadcast %20 : vector<1x64xf32> to vector<16x64xf32>
    %70 = arith.addf %68, %69 : vector<16x64xf32>
    %71 = arith.mulf %70, %70 : vector<16x64xf32>
    %72 = arith.mulf %70, %71 : vector<16x64xf32>
    %cst_31 = arith.constant 4.471500e-02 : f32
    %73 = vector.broadcast %cst_31 : f32 to vector<16x64xf32>
    %74 = arith.mulf %73, %72 : vector<16x64xf32>
    %75 = arith.addf %70, %74 : vector<16x64xf32>
    %cst_32 = arith.constant 0.797884583 : f32
    %76 = vector.broadcast %cst_32 : f32 to vector<16x64xf32>
    %77 = arith.mulf %76, %75 : vector<16x64xf32>
    %78 = math.tanh %77 : vector<16x64xf32>
    %cst_33 = arith.constant 1.000000e+00 : f32
    %79 = vector.broadcast %cst_33 : f32 to vector<16x64xf32>
    %80 = arith.addf %79, %78 : vector<16x64xf32>
    %cst_34 = arith.constant 5.000000e-01 : f32
    %81 = vector.broadcast %cst_34 : f32 to vector<16x64xf32>
    %82 = arith.mulf %81, %80 : vector<16x64xf32>
    %83 = arith.mulf %70, %82 : vector<16x64xf32>
    %cst_35 = arith.constant dense<0.000000e+00> : vector<16x32xf32>
    %84 = tpu.matmul %83, %15, %cst_35 {dimension_numbers = #tpu.dot_dimension_numbers<[1], [0], [0], [1], [0, 0, 1, 1], [], []>} : vector<16x64xf32>, vector<64x32xf32>, vector<16x32xf32> -> vector<16x32xf32>
    %85 = vector.broadcast %21 : vector<1x32xf32> to vector<16x32xf32>
    %86 = arith.addf %84, %85 : vector<16x32xf32>
    %87 = arith.addf %86, %67 : vector<16x32xf32>
    %cst_36 = arith.constant dense<0.000000e+00> : vector<16xf32>
    %88 = vector.multi_reduction <add>, %87, %cst_36 [1] : vector<16x32xf32> to vector<16xf32>
    %89 = vector.shape_cast %88 : vector<16xf32> to vector<16x1xf32>
    %cst_37 = arith.constant 3.200000e+01 : f32
    %90 = vector.broadcast %cst_37 : f32 to vector<16x1xf32>
    %91 = arith.divf %89, %90 : vector<16x1xf32>
    %92 = vector.broadcast %91 : vector<16x1xf32> to vector<16x32xf32>
    %93 = arith.subf %87, %92 : vector<16x32xf32>
    %94 = arith.mulf %93, %93 : vector<16x32xf32>
    %cst_38 = arith.constant dense<0.000000e+00> : vector<16xf32>
    %95 = vector.multi_reduction <add>, %94, %cst_38 [1] : vector<16x32xf32> to vector<16xf32>
    %96 = vector.shape_cast %95 : vector<16xf32> to vector<16x1xf32>
    %cst_39 = arith.constant 3.200000e+01 : f32
    %97 = vector.broadcast %cst_39 : f32 to vector<16x1xf32>
    %98 = arith.divf %96, %97 : vector<16x1xf32>
    %99 = vector.broadcast %91 : vector<16x1xf32> to vector<16x32xf32>
    %100 = arith.subf %87, %99 : vector<16x32xf32>
    %cst_40 = arith.constant 9.99999996E-13 : f32
    %101 = vector.broadcast %cst_40 : f32 to vector<16x1xf32>
    %102 = arith.addf %98, %101 : vector<16x1xf32>
    %103 = math.rsqrt %102 : vector<16x1xf32>
    %104 = vector.broadcast %103 : vector<16x1xf32> to vector<16x32xf32>
    %105 = arith.mulf %100, %104 : vector<16x32xf32>
    %106 = vector.broadcast %22 : vector<1x32xf32> to vector<16x32xf32>
    %107 = arith.mulf %105, %106 : vector<16x32xf32>
    %108 = vector.broadcast %23 : vector<1x32xf32> to vector<16x32xf32>
    %109 = arith.addf %107, %108 : vector<16x32xf32>
    %c0_41 = arith.constant 0 : index
    %c32 = arith.constant 32 : index
    %110 = vector.load %arg4[%c0_41, %c32] : memref<32x304xf32, #tpu.memory_space<vmem>>, vector<32x32xf32>
    %c0_42 = arith.constant 0 : index
    %c96 = arith.constant 96 : index
    %111 = vector.load %arg4[%c0_42, %c96] : memref<32x304xf32, #tpu.memory_space<vmem>>, vector<32x32xf32>
    %c0_43 = arith.constant 0 : index
    %c192 = arith.constant 192 : index
    %112 = vector.load %arg4[%c0_43, %c192] : memref<32x304xf32, #tpu.memory_space<vmem>>, vector<32x64xf32>
    %c0_44 = arith.constant 0 : index
    %c32_45 = arith.constant 32 : index
    %113 = vector.load %arg5[%c0_44, %c32_45] : memref<64x64xf32, #tpu.memory_space<vmem>>, vector<64x32xf32>
    %114 = vector.extract_strided_slice %3 {offsets = [4, 0], sizes = [1, 32], strides = [1, 1]} : vector<8x128xf32> to vector<1x32xf32>
    %115 = vector.extract_strided_slice %3 {offsets = [4, 32], sizes = [1, 32], strides = [1, 1]} : vector<8x128xf32> to vector<1x32xf32>
    %116 = vector.extract_strided_slice %3 {offsets = [4, 64], sizes = [1, 32], strides = [1, 1]} : vector<8x128xf32> to vector<1x32xf32>
    %117 = vector.extract_strided_slice %3 {offsets = [4, 96], sizes = [1, 32], strides = [1, 1]} : vector<8x128xf32> to vector<1x32xf32>
    %118 = vector.extract_strided_slice %3 {offsets = [5, 0], sizes = [1, 64], strides = [1, 1]} : vector<8x128xf32> to vector<1x64xf32>
    %119 = vector.extract_strided_slice %3 {offsets = [5, 64], sizes = [1, 32], strides = [1, 1]} : vector<8x128xf32> to vector<1x32xf32>
    %120 = vector.extract_strided_slice %3 {offsets = [5, 96], sizes = [1, 32], strides = [1, 1]} : vector<8x128xf32> to vector<1x32xf32>
    %121 = vector.extract_strided_slice %3 {offsets = [6, 0], sizes = [1, 32], strides = [1, 1]} : vector<8x128xf32> to vector<1x32xf32>
    %122 = vector.extract_strided_slice %10 {offsets = [0, 64], sizes = [32, 32], strides = [1, 1]} : vector<32x128xf32> to vector<32x32xf32>
    %123 = vector.extract_strided_slice %10 {offsets = [0, 96], sizes = [32, 32], strides = [1, 1]} : vector<32x128xf32> to vector<32x32xf32>
    %cst_46 = arith.constant dense<0.000000e+00> : vector<16x32xf32>
    %124 = tpu.matmul %109, %110, %cst_46 {dimension_numbers = #tpu.dot_dimension_numbers<[1], [0], [0], [1], [0, 0, 1, 1], [], []>} : vector<16x32xf32>, vector<32x32xf32>, vector<16x32xf32> -> vector<16x32xf32>
    %125 = vector.broadcast %114 : vector<1x32xf32> to vector<16x32xf32>
    %126 = arith.addf %124, %125 : vector<16x32xf32>
    %cst_47 = arith.constant dense<0.000000e+00> : vector<16x32xf32>
    %127 = tpu.matmul %126, %122, %cst_47 {dimension_numbers = #tpu.dot_dimension_numbers<[1], [1], [0], [0], [0, 0, 1, 0], [], []>} : vector<16x32xf32>, vector<32x32xf32>, vector<16x32xf32> -> vector<16x32xf32>
    %cst_48 = arith.constant 0.353553385 : f32
    %128 = vector.broadcast %cst_48 : f32 to vector<16x32xf32>
    %129 = arith.mulf %127, %128 : vector<16x32xf32>
    %130 = arith.addf %129, %2 : vector<16x32xf32>
    %cst_49 = arith.constant dense<0xFF800000> : vector<16xf32>
    %131 = vector.multi_reduction <maximumf>, %130, %cst_49 [1] : vector<16x32xf32> to vector<16xf32>
    %132 = vector.shape_cast %131 : vector<16xf32> to vector<16x1xf32>
    %133 = vector.broadcast %132 : vector<16x1xf32> to vector<16x32xf32>
    %134 = arith.subf %130, %133 : vector<16x32xf32>
    %135 = math.exp %134 : vector<16x32xf32>
    %cst_50 = arith.constant dense<0.000000e+00> : vector<16x32xf32>
    %136 = tpu.matmul %135, %11, %cst_50 {dimension_numbers = #tpu.dot_dimension_numbers<[1], [0], [0], [1], [0, 0, 1, 1], [], []>} : vector<16x32xf32>, vector<32x32xf32>, vector<16x32xf32> -> vector<16x32xf32>
    %137 = tpu.reciprocal %136 {approx = true} : vector<16x32xf32> -> vector<16x32xf32>
    %138 = arith.mulf %135, %137 : vector<16x32xf32>
    %cst_51 = arith.constant dense<0.000000e+00> : vector<16x32xf32>
    %139 = tpu.matmul %138, %123, %cst_51 {dimension_numbers = #tpu.dot_dimension_numbers<[1], [0], [0], [1], [0, 0, 1, 1], [], []>} : vector<16x32xf32>, vector<32x32xf32>, vector<16x32xf32> -> vector<16x32xf32>
    %cst_52 = arith.constant dense<0.000000e+00> : vector<16x32xf32>
    %140 = tpu.matmul %139, %111, %cst_52 {dimension_numbers = #tpu.dot_dimension_numbers<[1], [0], [0], [1], [0, 0, 1, 1], [], []>} : vector<16x32xf32>, vector<32x32xf32>, vector<16x32xf32> -> vector<16x32xf32>
    %141 = vector.broadcast %115 : vector<1x32xf32> to vector<16x32xf32>
    %142 = arith.addf %140, %141 : vector<16x32xf32>
    %143 = arith.addf %142, %109 : vector<16x32xf32>
    %cst_53 = arith.constant dense<0.000000e+00> : vector<16xf32>
    %144 = vector.multi_reduction <add>, %143, %cst_53 [1] : vector<16x32xf32> to vector<16xf32>
    %145 = vector.shape_cast %144 : vector<16xf32> to vector<16x1xf32>
    %cst_54 = arith.constant 3.200000e+01 : f32
    %146 = vector.broadcast %cst_54 : f32 to vector<16x1xf32>
    %147 = arith.divf %145, %146 : vector<16x1xf32>
    %148 = vector.broadcast %147 : vector<16x1xf32> to vector<16x32xf32>
    %149 = arith.subf %143, %148 : vector<16x32xf32>
    %150 = arith.mulf %149, %149 : vector<16x32xf32>
    %cst_55 = arith.constant dense<0.000000e+00> : vector<16xf32>
    %151 = vector.multi_reduction <add>, %150, %cst_55 [1] : vector<16x32xf32> to vector<16xf32>
    %152 = vector.shape_cast %151 : vector<16xf32> to vector<16x1xf32>
    %cst_56 = arith.constant 3.200000e+01 : f32
    %153 = vector.broadcast %cst_56 : f32 to vector<16x1xf32>
    %154 = arith.divf %152, %153 : vector<16x1xf32>
    %155 = vector.broadcast %147 : vector<16x1xf32> to vector<16x32xf32>
    %156 = arith.subf %143, %155 : vector<16x32xf32>
    %cst_57 = arith.constant 9.99999996E-13 : f32
    %157 = vector.broadcast %cst_57 : f32 to vector<16x1xf32>
    %158 = arith.addf %154, %157 : vector<16x1xf32>
    %159 = math.rsqrt %158 : vector<16x1xf32>
    %160 = vector.broadcast %159 : vector<16x1xf32> to vector<16x32xf32>
    %161 = arith.mulf %156, %160 : vector<16x32xf32>
    %162 = vector.broadcast %116 : vector<1x32xf32> to vector<16x32xf32>
    %163 = arith.mulf %161, %162 : vector<16x32xf32>
    %164 = vector.broadcast %117 : vector<1x32xf32> to vector<16x32xf32>
    %165 = arith.addf %163, %164 : vector<16x32xf32>
    %cst_58 = arith.constant dense<0.000000e+00> : vector<16x64xf32>
    %166 = tpu.matmul %165, %112, %cst_58 {dimension_numbers = #tpu.dot_dimension_numbers<[1], [0], [0], [1], [0, 0, 1, 1], [], []>} : vector<16x32xf32>, vector<32x64xf32>, vector<16x64xf32> -> vector<16x64xf32>
    %167 = vector.broadcast %118 : vector<1x64xf32> to vector<16x64xf32>
    %168 = arith.addf %166, %167 : vector<16x64xf32>
    %169 = arith.mulf %168, %168 : vector<16x64xf32>
    %170 = arith.mulf %168, %169 : vector<16x64xf32>
    %cst_59 = arith.constant 4.471500e-02 : f32
    %171 = vector.broadcast %cst_59 : f32 to vector<16x64xf32>
    %172 = arith.mulf %171, %170 : vector<16x64xf32>
    %173 = arith.addf %168, %172 : vector<16x64xf32>
    %cst_60 = arith.constant 0.797884583 : f32
    %174 = vector.broadcast %cst_60 : f32 to vector<16x64xf32>
    %175 = arith.mulf %174, %173 : vector<16x64xf32>
    %176 = math.tanh %175 : vector<16x64xf32>
    %cst_61 = arith.constant 1.000000e+00 : f32
    %177 = vector.broadcast %cst_61 : f32 to vector<16x64xf32>
    %178 = arith.addf %177, %176 : vector<16x64xf32>
    %cst_62 = arith.constant 5.000000e-01 : f32
    %179 = vector.broadcast %cst_62 : f32 to vector<16x64xf32>
    %180 = arith.mulf %179, %178 : vector<16x64xf32>
    %181 = arith.mulf %168, %180 : vector<16x64xf32>
    %cst_63 = arith.constant dense<0.000000e+00> : vector<16x32xf32>
    %182 = tpu.matmul %181, %113, %cst_63 {dimension_numbers = #tpu.dot_dimension_numbers<[1], [0], [0], [1], [0, 0, 1, 1], [], []>} : vector<16x64xf32>, vector<64x32xf32>, vector<16x32xf32> -> vector<16x32xf32>
    %183 = vector.broadcast %119 : vector<1x32xf32> to vector<16x32xf32>
    %184 = arith.addf %182, %183 : vector<16x32xf32>
    %185 = arith.addf %184, %165 : vector<16x32xf32>
    %cst_64 = arith.constant dense<0.000000e+00> : vector<16xf32>
    %186 = vector.multi_reduction <add>, %185, %cst_64 [1] : vector<16x32xf32> to vector<16xf32>
    %187 = vector.shape_cast %186 : vector<16xf32> to vector<16x1xf32>
    %cst_65 = arith.constant 3.200000e+01 : f32
    %188 = vector.broadcast %cst_65 : f32 to vector<16x1xf32>
    %189 = arith.divf %187, %188 : vector<16x1xf32>
    %190 = vector.broadcast %189 : vector<16x1xf32> to vector<16x32xf32>
    %191 = arith.subf %185, %190 : vector<16x32xf32>
    %192 = arith.mulf %191, %191 : vector<16x32xf32>
    %cst_66 = arith.constant dense<0.000000e+00> : vector<16xf32>
    %193 = vector.multi_reduction <add>, %192, %cst_66 [1] : vector<16x32xf32> to vector<16xf32>
    %194 = vector.shape_cast %193 : vector<16xf32> to vector<16x1xf32>
    %cst_67 = arith.constant 3.200000e+01 : f32
    %195 = vector.broadcast %cst_67 : f32 to vector<16x1xf32>
    %196 = arith.divf %194, %195 : vector<16x1xf32>
    %197 = vector.broadcast %189 : vector<16x1xf32> to vector<16x32xf32>
    %198 = arith.subf %185, %197 : vector<16x32xf32>
    %cst_68 = arith.constant 9.99999996E-13 : f32
    %199 = vector.broadcast %cst_68 : f32 to vector<16x1xf32>
    %200 = arith.addf %196, %199 : vector<16x1xf32>
    %201 = math.rsqrt %200 : vector<16x1xf32>
    %202 = vector.broadcast %201 : vector<16x1xf32> to vector<16x32xf32>
    %203 = arith.mulf %198, %202 : vector<16x32xf32>
    %204 = vector.broadcast %120 : vector<1x32xf32> to vector<16x32xf32>
    %205 = arith.mulf %203, %204 : vector<16x32xf32>
    %206 = vector.broadcast %121 : vector<1x32xf32> to vector<16x32xf32>
    %207 = arith.addf %205, %206 : vector<16x32xf32>
    %c0_69 = arith.constant 0 : index
    %c256 = arith.constant 256 : index
    %208 = vector.load %arg4[%c0_69, %c256] : memref<32x304xf32, #tpu.memory_space<vmem>>, vector<32x16xf32>
    %cst_70 = arith.constant dense<0.000000e+00> : vector<16x16xf32>
    %209 = tpu.matmul %207, %208, %cst_70 {dimension_numbers = #tpu.dot_dimension_numbers<[1], [0], [0], [1], [0, 0, 1, 1], [], []>} : vector<16x32xf32>, vector<32x16xf32>, vector<16x16xf32> -> vector<16x16xf32>
    %210 = vector.extract_strided_slice %3 {offsets = [7, 0], sizes = [1, 16], strides = [1, 1]} : vector<8x128xf32> to vector<1x16xf32>
    %211 = vector.broadcast %210 : vector<1x16xf32> to vector<16x16xf32>
    %212 = arith.addf %209, %211 : vector<16x16xf32>
    %213 = vector.extract_strided_slice %138 {offsets = [0, 0], sizes = [16, 16], strides = [1, 1]} : vector<16x32xf32> to vector<16x16xf32>
    %214 = vector.extract_strided_slice %138 {offsets = [0, 16], sizes = [16, 16], strides = [1, 1]} : vector<16x32xf32> to vector<16x16xf32>
    %215 = arith.addf %213, %214 : vector<16x16xf32>
    %216 = tpu.concatenate %215, %212 in 1 : vector<16x16xf32>, vector<16x16xf32> -> vector<16x32xf32>
    %c0_71 = arith.constant 0 : index
    %c0_72 = arith.constant 0 : index
    %217 = vector.load %arg7[%c0_71, %c0_72] : memref<16x32xf32, #tpu.memory_space<vmem>>, vector<16x32xf32>
    tpu.vector_store %arg7[%c0_71, %c0_72], %216 {strides = array<i32>} : memref<16x32xf32, #tpu.memory_space<vmem>>, vector<16x32xf32>,
    return
  }
}

</mosaic_0001>

<bundles_post_ra>
// kernel: step2_forward.1
= control target key start
LH: loop header
LB: loop body
LE: loop exit
PB: predicated region body
PF: predicated region fallthrough
CT: control target
= control target key end

     0   :  { %12 = vsyncpa [#allocation3], 0  ;;  %s1849_s0 = inlined_call_operand.hbm [shape: f32[16,32], index: 0, kind: input, shape index: {}]   ;;  %s1850_s1 = inlined_call_operand.vmem [shape: f32[32,32], index: 1, kind: input, shape index: {}]   ;;  %s1851_s2 = inlined_call_operand.vmem [shape: f32[16,32], index: 2, kind: input, shape index: {}]   ;;  %s1852_s3 = inlined_call_operand.vmem [shape: f32[32,256], index: 3, kind: input, shape index: {}]   ;;  %s1853_s4 = inlined_call_operand.hbm [shape: f32[32,304], index: 4, kind: input, shape index: {}]   ;;  %s1854_s5 = inlined_call_operand.hbm [shape: f32[64,64], index: 5, kind: input, shape index: {}]   ;;  %s1855_s6 = inlined_call_operand.hbm [shape: f32[8,128], index: 6, kind: input, shape index: {}]   ;;  %s1856_s7 = inlined_call_operand.vmem [shape: f32[16,32], index: 7, kind: output, shape index: {}]  }
   0x1   :  { %13 = vsyncpa [#allocation5], 0  ;;  %s38_s26 = sshll.u32 %s1853_s4, 4  ;;  %s39_s26 = int_to_ptr.hbm [resolvable:$true] %s38_s26 }
   0x2   :  { %14 = vsyncpa [#allocation8], 0  ;;  %s1410_s27 = smov [#allocation4]   ;;  %s19_s8 = sshll.u32 %s1849_s0, 4  ;;  %s20_s8 = int_to_ptr.hbm [resolvable:$true] %s19_s8 }
   0x3   :  { %s40_s28 = sshll.u32 %s1410_s27, 4  ;;  %s1411_s9 = smov 384   ;;  %s41_s28 = int_to_ptr.vmem [resolvable:$true] %s40_s28 }
   0x4   :  { %s1412_s10 = smov 24   ;;  %s1413_s11 = smov [#allocation2]  }
   0x5   :  { %46 = dma.hbm_to_vmem [thread:$0]  %s39_s26, 1536, %s41_s28, [#allocation5], %s1411_s9, %s1411_s9, %s1412_s10  }
   0x6   :  { %s21_s12 = sshll.u32 %s1413_s11, 4  ;;  %s1414_s13 = smov 128   ;;  %s22_s12 = int_to_ptr.vmem [resolvable:$true] %s21_s12 }
   0x7   :  { %s1415_s14 = smov 8   ;;  %s51_s16 = sshll.u32 %s1854_s5, 4  ;;  %s52_s16 = int_to_ptr.hbm [resolvable:$true] %s51_s16 }
   0x8   :  { %27 = dma.hbm_to_vmem [thread:$0]  %s20_s8, 256, %s22_s12, [#allocation3], %s1414_s13, %s1414_s13, %s1415_s14  }
   0x9   :  { %s1416_s17 = smov [#allocation6]   ;;  %s65_s20 = sshll.u32 %s1855_s6, 4  ;;  %s66_s20 = int_to_ptr.hbm [resolvable:$true] %s65_s20 }
   0xa   :  { %s53_s18 = sshll.u32 %s1416_s17, 4  ;;  %s1417_s21 = smov [#allocation7]   ;;  %s54_s18 = int_to_ptr.vmem [resolvable:$true] %s53_s18 }
   0xb   :  { %59 = dma.hbm_to_vmem [thread:$0]  %s52_s16, 1024, %s54_s18, [#allocation5], %s1414_s13, %s1414_s13, %s1415_s14  }
   0xc   :  { %s67_s22 = sshll.u32 %s1417_s21, 4  ;;  %s68_s22 = int_to_ptr.vmem [resolvable:$true] %s67_s22 }
   0xd   :  { %70 = dma.hbm_to_vmem [thread:$0]  %s66_s20, 128, %s68_s22, [#allocation8]  }
   0xe   :  { %1404 = dma.done.wait [#allocation3], 256  }
   0xf   :  { %1405 = vsyncadd [#allocation3], 4294967040 }
  0x10   :  { %1406 = dma.done.wait [#allocation5], 2560  }
  0x11   :  { %1407 = vsyncadd [#allocation5], 4294964736 }
  0x12   :  { %1408 = dma.done.wait [#allocation8], 128  }
  0x13   :  { %1409 = vsyncadd [#allocation8], 4294967168  ;;  %v99_v0 = vld [vmem:[%s1852_s3 + $0x30] sm:$0xff]  ;;  %v98_v1 = vld [vmem:[%s1852_s3 + $0x20] sm:$0xff]  ;;  %vm101_vm0 = vcmask 261120   ;;  %s1418_s18 = smov 96  }
  0x14   :  { %126 = vmatpush.msra.mxu0 %v99_v0  ;;  %1157 = vmatpush.msra.mxu1 %v99_v0  ;;  %v97_v2 = vld [vmem:[%s1852_s3 + $0x10] sm:$0xff]  ;;  %v96_v3 = vld [vmem:[%s1852_s3] sm:$0xff]  ;;  %v92_v5 = vld [vmem:[%s1850_s1 + $0x18] sm:$0xff]  ;;  %s1419_s5 = smov 112   ;;  %s1422_s23 = smov 32   ;;  %vm512_vm8 = vcmask 523264  }
  0x15   :  { %v89_v4 = vld [vmem:[%s1850_s1] sm:$0xff]  ;;  %v1494_v6 = vld [vmem:[#allocation4 + $0x48] sm:$0xff]  ;;  %v1501_v8 = vld [vmem:[#allocation4 + $0x18] sm:$0xff]  ;;  %s1423_s24 = smov 16  }
  0x16   :  { %127 = vmatpush.msra.mxu0 %v98_v1  ;;  %1158 = vmatpush.msra.mxu1 %v98_v1  ;;  %v1498_v7 = vld [vmem:[#allocation4 + $0x30] sm:$0xff]  ;;  %v1504_v9 = vld [vmem:[#allocation4] sm:$0xff]  ;;  %v90_v10 = vld [vmem:[%s1850_s1 + $0x8] sm:$0xff] }
  0x17   :  { %v1510_v11 = vld [vmem:[#allocation2] sm:$0xff]  ;;  %v91_v12 = vld [vmem:[%s1850_s1 + $0x10] sm:$0xff]  ;;  %v1519_v13 = vld [vmem:[#allocation2 + $0x8] sm:$0xff] }
  0x18   :  { %128 = vmatpush.msra.mxu0 %v97_v2  ;;  %1159 = vmatpush.msra.mxu1 %v97_v2  ;;  %v1524_v14 = vld [vmem:[#allocation7] sm:$0xff]  ;;  %v146_v18 = vld [vmem:[%s1852_s3 + $0x38] sm:$0xff]  ;;  %v145_v23 = vld [vmem:[%s1852_s3 + $0x28] sm:$0xff] }
  0x19   :  { %v100_v15 = vperm.slane %v1524_v14, 0  ;;  %v144_v27 = vld [vmem:[%s1852_s3 + $0x18] sm:$0xff]  ;;  %v143_v32 = vld [vmem:[%s1852_s3 + $0x8] sm:$0xff]  ;;  %v1556_v33 = vperm.slane %v1524_v14, 1  ;;  %v1577_v46 = vld [vmem:[%s1851_s2] sm:$0xff] }
  0x1a   :  { %129 = vmatpush.msra.mxu0 %v96_v3  ;;  %1160 = vmatpush.msra.mxu1 %v96_v3  ;;  %v1584_v51 = vld [vmem:[%s1851_s2 + $0x8] sm:$0xff]  ;;  %v1588_v55 = vld [vmem:[#allocation4 + $0x40] sm:$0xff]  ;;  %v1595_v58 = vld [vmem:[#allocation4 + $0x10] sm:$0xff]  ;;  %s1420_s2 = smov 64  }
  0x1b   :  { %1115 = vmatmul.msk.f32.vlgmr.msra.gmra.mxu0 %vm101_vm0, %v89_v4  ;;  %1118 = vmatmul.msk.f32.vlgmr.msra.gmra.mxu1 %vm101_vm0, %v92_v5  ;;  %v1590_v56 = vld [vmem:[#allocation4 + $0x58] sm:$0xff]  ;;  %v1597_v59 = vld [vmem:[#allocation4 + $0x28] sm:$0xff]  ;;  %v1604_v61 = vld [vmem:[#allocation4 + $0x50] sm:$0xff] }
  0x1c   :  { %190 = vmatpush.msrb.mxu1 %v1494_v6  ;;  %v1175_v57 = vpack.i.bf16 %v1588_v55, %v1590_v56  ;;  %v1180_v60 = vpack.i.bf16 %v1595_v58, %v1597_v59  ;;  %v1606_v62 = vld [vmem:[#allocation4 + $0x38] sm:$0xff]  ;;  %v1611_v0 = vld [vmem:[#allocation4 + $0x20] sm:$0xff]  ;;  %v1615_v1 = vld [vmem:[#allocation4 + $0x8] sm:$0xff] }
  0x1d   :  { %v1235_v63 = vpack.i.bf16 %v1606_v62, %v1604_v61  ;;  %v1240_v2 = vpack.i.bf16 %v1615_v1, %v1611_v0 }
  0x1e   :  { %191 = vmatpush.msrb.mxu1 %v1498_v7 }
  0x20   :  { %192 = vmatpush.msrb.mxu1 %v1501_v8 }
  0x22   :  { %193 = vmatpush.msrb.mxu1 %v1504_v9 }
  0x23   :  { %1116 = vmatmul.msk.f32.gmra.mxu0 %vm101_vm0, %v90_v10  ;;  %1119 = vmatmul.msk.f32.vlgmr.msrb.gmra.mxu1 %vm101_vm0, %v1510_v11 }
  0x2b   :  { %1117 = vmatmul.msk.f32.gmra.mxu0 %vm101_vm0, %v91_v12  ;;  %1120 = vmatmul.msk.f32.gmra.mxu1 %vm101_vm0, %v1519_v13 }
  0x98   :  { %v131_v16 = vpop.f32.mrf.mxu0  ;;  %v140_v17 = vpop.f32.mrf.mxu1 }
  0x99   :  { %v141_v19 = vadd.f32 %v140_v17, %v100_v15  ;;  %v132_v29 = vadd.f32 %v131_v16, %v100_v15 }
  0x9b   :  { %v1530_v20 = vmul.f32 %v146_v18, %v141_v19  ;;  %v1560_v34 = vmul.f32 %v143_v32, %v132_v29 }
  0x9d   :  { %1121 = vmatpush.xpose.msk.msra.mxu2 %vm101_vm0, %v1530_v20 }
  0xa0   :  { %v134_v21 = vpop.f32.mrf.mxu0  ;;  %v195_v31 = vpop.f32.mrf.mxu1 }
  0xa1   :  { %v135_v25 = vadd.f32 %v134_v21, %v100_v15  ;;  %v196_v35 = vadd.f32 %v195_v31, %v1556_v33 }
  0xa3   :  { %v1548_v30 = vmul.f32 %v144_v27, %v135_v25  ;;  %v1624_v25 = vpack.i.bf16 %v1498_v7, %v1494_v6  ;;  %v1630_v27 = vpack.i.bf16 %v1504_v9, %v1501_v8 }
  0xa5   :  { %v1567_v36 = vpack.i.bf16 %v1560_v34, %v1548_v30 }
  0xa8   :  { %v137_v22 = vpop.f32.mrf.mxu0  ;;  %v198_v37 = vpop.f32.mrf.mxu1 }
  0xa9   :  { %v138_v24 = vadd.f32 %v137_v22, %v100_v15  ;;  %v199_v38 = vadd.f32 %v198_v37, %v1556_v33 }
  0xab   :  { %v1537_v26 = vmul.f32 %v145_v23, %v138_v24 }
  0xad   :  { %1122 = vmatpush.xpose.msk.msra.mxu2 %vm101_vm0, %v1537_v26  ;;  %v1546_v28 = vpack.i.bf16 %v1537_v26, %v1530_v20 }
  0xaf   :  { %1186 = vrot.lane.b32.xlu2 %v1546_v28, %s1418_s18 }
  0xb1   :  { %1123 = vmatpush.xpose.msk.msra.mxu2 %vm101_vm0, %v1548_v30 }
  0xb5   :  { %1124 = vmatpush.xpose.msk.msra.mxu2 %vm101_vm0, %v1560_v34 }
  0xb7   :  { %1191 = vrot.lane.b32.xlu2 %v1567_v36, %s1418_s18 }
  0xb8   :  { %1125 = vmatmul.msk.f32.vlgmr.msra.gmra.mxu2 %vm101_vm0, %v196_v35 }
  0xb9   :  { %479 = vmatpush.msrb.mxu2 %v1604_v61 }
  0xbb   :  { %480 = vmatpush.msrb.mxu2 %v1606_v62 }
  0xbd   :  { %481 = vmatpush.msrb.mxu2 %v1611_v0 }
  0xbf   :  { %482 = vmatpush.msrb.mxu2 %v1615_v1  ;;  %1196 = vrot.lane.b32.xlu2 %v1624_v25, %s1420_s2 }
  0xc0   :  { %1126 = vmatmul.msk.f32.gmra.mxu2 %vm101_vm0, %v199_v38 }
  0xc7   :  { %1201 = vrot.lane.b32.xlu2 %v1630_v27, %s1420_s2 }
 0x109   :  { %v1187_v39 = vpop.permute.xlu2 %1186 }
 0x10a   :  { %v1188_v40 = vunpack.i.l.bf16 %v1187_v39  ;;  %v1189_v41 = vunpack.i.h.bf16 %v1187_v39 }
 0x10c   :  { %337 = vmatpush.msra.mxu1 %v1188_v40 }
 0x10e   :  { %338 = vmatpush.msra.mxu1 %v1189_v41 }
 0x111   :  { %v1192_v42 = vpop.permute.xlu2 %1191 }
 0x112   :  { %v1193_v43 = vunpack.i.l.bf16 %v1192_v42  ;;  %v1194_v44 = vunpack.i.h.bf16 %v1192_v42 }
 0x114   :  { %339 = vmatpush.msra.mxu1 %v1193_v43 }
 0x116   :  { %340 = vmatpush.msra.mxu1 %v1194_v44 }
 0x119   :  { %v1197_v37 = vpop.permute.xlu2 %1196 }
 0x11a   :  { %v1198_v38 = vunpack.i.l.bf16 %v1197_v37  ;;  %v1199_v39 = vunpack.i.h.bf16 %v1197_v37 }
 0x121   :  { %v1202_v8 = vpop.permute.xlu2 %1201 }
 0x122   :  { %v1203_v9 = vunpack.i.l.bf16 %v1202_v8  ;;  %v1204_v40 = vunpack.i.h.bf16 %v1202_v8 }
 0x13b   :  { %v236_v45 = vpop.f32.mrf.mxu2 }
 0x13c   :  { %v242_v47 = vmul.f32 0.35355338, %v236_v45 }
 0x13e   :  { %v244_v48 = vadd.f32 %v242_v47, %v1577_v46 }
 0x140   :  { %v246_v49 = vsel %vm101_vm0, %v244_v48, -inf }
 0x141   :  { %247 = vmax.xlane.f32.xlu0 %v246_v49 }
 0x143   :  { %v239_v50 = vpop.f32.mrf.mxu2 }
 0x144   :  { %v243_v52 = vmul.f32 0.35355338, %v239_v50 }
 0x146   :  { %v245_v53 = vadd.f32 %v243_v52, %v1584_v51 }
 0x148   :  { %v249_v54 = vsel %vm101_vm0, %v245_v53, -inf }
 0x149   :  { %250 = vmax.xlane.f32.xlu1 %v249_v54  ;;  %v1421_v54 = vmov 32.0  }
 0x155   :  { %1176 = vrot.lane.b32.xlu0 %v1175_v57, %s1419_s5 }
 0x15d   :  { %365 = vrot.lane.b32.xlu0 %v1556_v33, %s1418_s18 }
 0x162   :  { %1181 = vrot.lane.b32.xlu1 %v1180_v60, %s1419_s5 }
 0x1b4   :  { %v248_v3 = vpop.xlane.xlu0 %247 }
 0x1b5   :  { %v252_v12 = vsub.f32 %v244_v48, %v248_v3 }
 0x1b7   :  { %v254_v16 = vmul.f32 1.442695, %v252_v12 }
 0x1b9   :  { %1265 = vpow2.f32 %v254_v16 }
 0x1bc   :  { %v251_v15 = vpop.xlane.xlu1 %250 }
 0x1bd   :  { %v253_v17 = vsub.f32 %v245_v53, %v251_v15 }
 0x1bf   :  { %v256_v21 = vmul.f32 1.442695, %v253_v17  ;;  %v1266_v23 = vpop.eup %1265 }
 0x1c1   :  { %1267 = vpow2.f32 %v256_v21 }
 0x1c7   :  { %v1177_v4 = vpop.permute.xlu0 %1176  ;;  %v1268_v24 = vpop.eup %1267 }
 0x1c8   :  { %v1178_v5 = vunpack.i.l.bf16 %v1177_v4  ;;  %v1179_v10 = vunpack.i.h.bf16 %v1177_v4 }
 0x1ca   :  { %292 = vmatpush.msra.mxu3 %v1178_v5  ;;  %717 = vmatpush.msra.mxu2 %v1178_v5 }
 0x1cc   :  { %293 = vmatpush.msra.mxu3 %v1179_v10  ;;  %718 = vmatpush.msra.mxu2 %v1179_v10 }
 0x1cf   :  { %v366_v43 = vpop.permute.xlu0 %365 }
 0x1d4   :  { %v1182_v18 = vpop.permute.xlu1 %1181 }
 0x1d5   :  { %v1183_v19 = vunpack.i.l.bf16 %v1182_v18  ;;  %v1184_v22 = vunpack.i.h.bf16 %v1182_v18 }
 0x1d7   :  { %294 = vmatpush.msra.mxu3 %v1183_v19  ;;  %719 = vmatpush.msra.mxu2 %v1183_v19 }
 0x1d9   :  { %295 = vmatpush.msra.mxu3 %v1184_v22  ;;  %720 = vmatpush.msra.mxu2 %v1184_v22 }
 0x1da   :  { %1127 = vmatmul.msk.f32.vlgmr.msra.gmra.mxu3 %vm101_vm0, %v1266_v23 }
 0x1db   :  { %386 = vmatpush.msrb.mxu3 %v1198_v38 }
 0x1dd   :  { %387 = vmatpush.msrb.mxu3 %v1199_v39 }
 0x1df   :  { %388 = vmatpush.msrb.mxu3 %v1203_v9 }
 0x1e1   :  { %389 = vmatpush.msrb.mxu3 %v1204_v40 }
 0x1e2   :  { %1128 = vmatmul.msk.f32.gmra.mxu3 %vm101_vm0, %v1268_v24 }
 0x25d   :  { %v297_v29 = vpop.f32.mrf.mxu3 }
 0x25e   :  { %1269 = vrcp.f32 %v297_v29 }
 0x264   :  { %v1270_v31 = vpop.eup %1269 }
 0x265   :  { %v305_v32 = vmul.f32 %v1270_v31, %v1266_v23  ;;  %v300_v35 = vpop.f32.mrf.mxu3  ;;  %v1654_v31 = vperm.slane %v1524_v14, 2 }
 0x266   :  { %1271 = vrcp.f32 %v300_v35 }
 0x267   :  { %1129 = vmatmul.msk.f32.vlgmr.msra.gmra.mxu1 %vm101_vm0, %v305_v32  ;;  %1273 = vrcp.f32 %v1421_v54 }
 0x26c   :  { %v1272_v6 = vpop.eup %1271 }
 0x26d   :  { %v306_v7 = vmul.f32 %v1272_v6, %v1268_v24  ;;  %v1274_v57 = vpop.eup %1273 }
 0x26e   :  { %v406_v60 = vmul.f32 32.0, %v1274_v57  ;;  %vm410_vm1 = vweird.f32 %v1274_v57 }
 0x26f   :  { %1130 = vmatmul.msk.f32.gmra.mxu1 %vm101_vm0, %v306_v7 }
 0x270   :  { %v407_v3 = vsub.f32 1.0, %v406_v60 }
 0x272   :  { %v408_v4 = vmul.f32 %v1274_v57, %v407_v3  ;;  %v1661_v3 = vld [vmem:[#allocation6 + $0x38] sm:$0xff] }
 0x273   :  { %527 = vmatpush.msrb.mxu0 %v1661_v3 }
 0x2e4   :  { %v342_v41 = vpop.f32.mrf.mxu1 }
 0x2e5   :  { %1131 = vmatmul.msk.f32.vlgmr.msrb.gmra.mxu3 %vm101_vm0, %v342_v41 }
 0x2ec   :  { %v345_v42 = vpop.f32.mrf.mxu1 }
 0x2ed   :  { %1132 = vmatmul.msk.f32.gmra.mxu3 %vm101_vm0, %v345_v42 }
 0x368   :  { %v391_v44 = vpop.f32.mrf.mxu3 }
 0x369   :  { %v392_v45 = vadd.f32 %v391_v44, %v366_v43 }
 0x36b   :  { %v397_v47 = vadd.f32 %v392_v45, %v1510_v11  ;;  %v409_v11 = vadd.f32 %v1274_v57, %v408_v4  ;;  %v1664_v4 = vld [vmem:[#allocation6 + $0x30] sm:$0xff] }
 0x36c   :  { %528 = vmatpush.msrb.mxu0 %v1664_v4 }
 0x36d   :  { %v399_v48 = vsel %vm101_vm0, %v397_v47, 0.0  ;;  %v1644_v5 = vsel %vm410_vm1, %v1274_v57, %v409_v11  ;;  %v1667_v11 = vld [vmem:[#allocation6 + $0x28] sm:$0xff] }
 0x36e   :  { %400 = vadd.xlane.f32.xlu2 %v399_v48  ;;  %529 = vmatpush.msrb.mxu0 %v1667_v11 }
 0x370   :  { %v394_v49 = vpop.f32.mrf.mxu3 }
 0x371   :  { %v395_v50 = vadd.f32 %v394_v49, %v366_v43 }
 0x373   :  { %v398_v52 = vadd.f32 %v395_v50, %v1519_v13 }
 0x375   :  { %v402_v53 = vsel %vm101_vm0, %v398_v52, 0.0 }
 0x376   :  { %403 = vadd.xlane.f32.xlu1 %v402_v53 }
 0x38f   :  { %450 = vrot.lane.b32.xlu1 %v1556_v33, %s1420_s2 }
 0x3e1   :  { %v401_v10 = vpop.xlane.xlu2 %400 }
 0x3e2   :  { %v412_v12 = vmul.f32 %v1644_v5, %v401_v10  ;;  %v1670_v10 = vld [vmem:[#allocation6 + $0x20] sm:$0xff] }
 0x3e3   :  { %530 = vmatpush.msrb.mxu0 %v1670_v10 }
 0x3e4   :  { %v414_v13 = vsub.f32 %v397_v47, %v412_v12  ;;  %v1245_v12 = vpack.i.bf16 %v1664_v4, %v1661_v3 }
 0x3e6   :  { %v416_v15 = vmul.f32 %v414_v13, %v414_v13 }
 0x3e8   :  { %v418_v16 = vsel %vm101_vm0, %v416_v15, 0.0  ;;  %v1677_v15 = vld [vmem:[#allocation6 + $0x18] sm:$0xff] }
 0x3e9   :  { %419 = vadd.xlane.f32.xlu0 %v418_v16  ;;  %v404_v17 = vpop.xlane.xlu1 %403  ;;  %v1679_v16 = vld [vmem:[#allocation6 + $0x10] sm:$0xff]  ;;  %531 = vmatpush.msrb.mxu0 %v1677_v15 }
 0x3ea   :  { %v413_v18 = vmul.f32 %v1644_v5, %v404_v17  ;;  %v1255_v17 = vpack.i.bf16 %v1679_v16, %v1677_v15 }
 0x3eb   :  { %532 = vmatpush.msrb.mxu0 %v1679_v16 }
 0x3ec   :  { %v415_v19 = vsub.f32 %v398_v52, %v413_v18  ;;  %v1683_v18 = vld [vmem:[#allocation6 + $0x8] sm:$0xff] }
 0x3ed   :  { %533 = vmatpush.msrb.mxu0 %v1683_v18 }
 0x3ee   :  { %v417_v21 = vmul.f32 %v415_v19, %v415_v19 }
 0x3f0   :  { %v421_v22 = vsel %vm101_vm0, %v417_v21, 0.0 }
 0x3f1   :  { %422 = vadd.xlane.f32.xlu2 %v421_v22 }
 0x3fd   :  { %455 = vrot.lane.b32.xlu0 %v1556_v33, %s1422_s23 }
 0x401   :  { %v451_v43 = vpop.permute.xlu1 %450 }
 0x409   :  { %509 = vrot.lane.b32.xlu2 %v1654_v31, %s1420_s2 }
 0x45c   :  { %v420_v23 = vpop.xlane.xlu0 %419 }
 0x45d   :  { %v424_v24 = vmul.f32 %v420_v23, %v1644_v5 }
 0x45f   :  { %v426_v29 = vadd.f32 1e-12, %v424_v24 }
 0x461   :  { %1275 = vrsqrt.f32 %v426_v29  ;;  %vm434_vm3 = vweird.f32 %v426_v29 }
 0x464   :  { %v423_v32 = vpop.xlane.xlu2 %422 }
 0x465   :  { %v425_v35 = vmul.f32 %v423_v32, %v1644_v5 }
 0x467   :  { %v1276_v6 = vpop.eup %1275  ;;  %v427_v7 = vadd.f32 1e-12, %v425_v35 }
 0x468   :  { %v429_v37 = vmul.f32 %v1276_v6, %v426_v29  ;;  %vm435_vm2 = vweird.f32 %v1276_v6 }
 0x469   :  { %1277 = vrsqrt.f32 %v427_v7  ;;  %vm436_vm4 = vmor %vm434_vm3, %vm435_vm2  ;;  %vm444_vm6 = vweird.f32 %v427_v7 }
 0x46a   :  { %v430_v38 = vmul.f32 %v1276_v6, %v429_v37 }
 0x46c   :  { %v431_v33 = vmul.f32 0.5, %v430_v38 }
 0x46e   :  { %v432_v39 = vsub.f32 1.5, %v431_v33 }
 0x46f   :  { %v1278_v8 = vpop.eup %1277  ;;  %v456_v47 = vpop.permute.xlu0 %455 }
 0x470   :  { %v439_v9 = vmul.f32 %v1278_v8, %v427_v7  ;;  %v433_v40 = vmul.f32 %v1276_v6, %v432_v39  ;;  %vm445_vm5 = vweird.f32 %v1278_v8 }
 0x471   :  { %vm446_vm7 = vmor %vm444_vm6, %vm445_vm5 }
 0x472   :  { %v440_v41 = vmul.f32 %v1278_v8, %v439_v9  ;;  %v437_v42 = vsel %vm436_vm4, %v1276_v6, %v433_v40 }
 0x473   :  { %v448_v44 = vmul.f32 %v437_v42, %v414_v13  ;;  %v1250_v13 = vpack.i.bf16 %v1670_v10, %v1667_v11 }
 0x474   :  { %v441_v45 = vmul.f32 0.5, %v440_v41 }
 0x475   :  { %v453_v48 = vmul.f32 %v451_v43, %v448_v44 }
 0x476   :  { %v442_v49 = vsub.f32 1.5, %v441_v45 }
 0x477   :  { %v458_v50 = vadd.f32 %v456_v47, %v453_v48 }
 0x478   :  { %v443_v52 = vmul.f32 %v1278_v8, %v442_v49  ;;  %v510_v49 = vpop.permute.xlu2 %509 }
 0x479   :  { %1133 = vmatmul.msk.f32.vlgmr.msrb.gmra.mxu2 %vm101_vm0, %v458_v50 }
 0x47a   :  { %v447_v53 = vsel %vm446_vm7, %v1278_v8, %v443_v52 }
 0x47b   :  { %v449_v54 = vmul.f32 %v447_v53, %v415_v19  ;;  %v1685_v19 = vld [vmem:[#allocation6] sm:$0xff] }
 0x47c   :  { %v1260_v21 = vpack.i.bf16 %v1685_v19, %v1683_v18  ;;  %534 = vmatpush.msrb.mxu0 %v1685_v19 }
 0x47d   :  { %v454_v57 = vmul.f32 %v451_v43, %v449_v54 }
 0x47f   :  { %v459_v60 = vadd.f32 %v456_v47, %v454_v57 }
 0x481   :  { %1134 = vmatmul.msk.f32.gmra.mxu2 %vm101_vm0, %v459_v60 }
 0x4fc   :  { %v484_v22 = vpop.f32.mrf.mxu2 }
 0x4fd   :  { %v485_v23 = vadd.f32 %v484_v22, %v1654_v31 }
 0x4ff   :  { %v490_v24 = vmul.f32 %v485_v23, %v485_v23 }
 0x501   :  { %v492_v29 = vmul.f32 %v490_v24, %v485_v23 }
 0x503   :  { %v494_v32 = vmul.f32 0.044715, %v492_v29 }
 0x504   :  { %v487_v35 = vpop.f32.mrf.mxu2 }
 0x505   :  { %v496_v6 = vadd.f32 %v494_v32, %v485_v23  ;;  %v488_v7 = vadd.f32 %v487_v35, %v1654_v31 }
 0x507   :  { %v498_v37 = vmul.f32 0.7978846, %v496_v6  ;;  %v491_v38 = vmul.f32 %v488_v7, %v488_v7 }
 0x509   :  { %1279 = vtanh.f32 %v498_v37  ;;  %v493_v33 = vmul.f32 %v491_v38, %v488_v7 }
 0x50b   :  { %v495_v39 = vmul.f32 0.044715, %v493_v33 }
 0x50d   :  { %v497_v8 = vadd.f32 %v495_v39, %v488_v7 }
 0x50f   :  { %v1280_v9 = vpop.eup %1279  ;;  %v499_v40 = vmul.f32 0.7978846, %v497_v8 }
 0x510   :  { %v502_v41 = vadd.f32 1.0, %v1280_v9 }
 0x511   :  { %1281 = vtanh.f32 %v499_v40 }
 0x512   :  { %v504_v42 = vmul.f32 0.5, %v502_v41 }
 0x514   :  { %v506_v43 = vmul.f32 %v504_v42, %v485_v23 }
 0x516   :  { %1135 = vmatmul.msk.f32.vlgmr.msrb.gmra.mxu0 %vm512_vm8, %v506_v43 }
 0x517   :  { %v1282_v44 = vpop.eup %1281 }
 0x518   :  { %v503_v45 = vadd.f32 1.0, %v1282_v44 }
 0x51a   :  { %v505_v47 = vmul.f32 0.5, %v503_v45 }
 0x51c   :  { %v507_v48 = vmul.f32 %v505_v47, %v488_v7 }
 0x51e   :  { %1136 = vmatmul.msk.f32.gmra.mxu0 %vm512_vm8, %v507_v48 }
 0x593   :  { %v536_v52 = vpop.f32.mrf.mxu0 }
 0x594   :  { %v537_v53 = vadd.f32 %v536_v52, %v510_v49 }
 0x596   :  { %v542_v54 = vadd.f32 %v537_v53, %v458_v50 }
 0x598   :  { %v544_v57 = vsel %vm101_vm0, %v542_v54, 0.0 }
 0x599   :  { %545 = vadd.xlane.f32.xlu0 %v544_v57 }
 0x59b   :  { %v539_v22 = vpop.f32.mrf.mxu0 }
 0x59c   :  { %v540_v24 = vadd.f32 %v539_v22, %v510_v49 }
 0x59e   :  { %v543_v29 = vadd.f32 %v540_v24, %v459_v60 }
 0x5a0   :  { %v547_v23 = vsel %vm101_vm0, %v543_v29, 0.0 }
 0x5a1   :  { %548 = vadd.xlane.f32.xlu1 %v547_v23 }
 0x5ba   :  { %1206 = vrot.lane.b32.xlu1 %v1624_v25, %s1418_s18 }
 0x5c2   :  { %644 = vrot.lane.b32.xlu1 %v1530_v20, %s1420_s2 }
 0x5ca   :  { %638 = vrot.lane.b32.xlu1 %v1560_v34, %s1420_s2 }
 0x5d2   :  { %1216 = vrot.lane.b32.xlu1 %v1546_v28, %s1422_s23 }
 0x5da   :  { %1221 = vrot.lane.b32.xlu1 %v1567_v36, %s1422_s23 }
 0x5e2   :  { %1226 = vrot.lane.b32.xlu1 %v1624_v25, %s1422_s23 }
 0x5ea   :  { %1231 = vrot.lane.b32.xlu1 %v1630_v27, %s1422_s23 }
 0x60c   :  { %v546_v50 = vpop.xlane.xlu0 %545 }
 0x60d   :  { %v550_v60 = vmul.f32 %v546_v50, %v1644_v5 }
 0x60f   :  { %v552_v32 = vsub.f32 %v542_v54, %v550_v60  ;;  %v593_v60 = vperm.slane %v1524_v14, 3 }
 0x611   :  { %v554_v35 = vmul.f32 %v552_v32, %v552_v32 }
 0x613   :  { %v556_v6 = vsel %vm101_vm0, %v554_v35, 0.0 }
 0x614   :  { %v549_v7 = vpop.xlane.xlu1 %548  ;;  %557 = vadd.xlane.f32.xlu2 %v556_v6 }
 0x615   :  { %v551_v20 = vmul.f32 %v549_v7, %v1644_v5 }
 0x617   :  { %v1712_v37 = vsub.f32 %v543_v29, %v551_v20 }
 0x619   :  { %v555_v34 = vmul.f32 %v1712_v37, %v1712_v37 }
 0x61b   :  { %v559_v28 = vsel %vm101_vm0, %v555_v34, 0.0 }
 0x61c   :  { %560 = vadd.xlane.f32.xlu0 %v559_v28 }
 0x62c   :  { %v1207_v36 = vpop.permute.xlu1 %1206  ;;  %588 = vrot.lane.b32.xlu2 %v1654_v31, %s1422_s23 }
 0x62d   :  { %v1209_v38 = vunpack.i.h.bf16 %v1207_v36  ;;  %v1208_v33 = vunpack.i.l.bf16 %v1207_v36 }
 0x62f   :  { %627 = vmatpush.msrb.mxu1 %v1208_v33 }
 0x630   :  { %1211 = vrot.lane.b32.xlu0 %v1630_v27, %s1418_s18 }
 0x631   :  { %628 = vmatpush.msrb.mxu1 %v1209_v38 }
 0x634   :  { %v645_v39 = vpop.permute.xlu1 %644  ;;  %640 = vrot.lane.b32.xlu2 %v1548_v30, %s1420_s2 }
 0x635   :  { %1139 = vmatpush.xpose.msk.msra.mxu3 %vm101_vm0, %v645_v39 }
 0x638   :  { %642 = vrot.lane.b32.xlu0 %v1537_v26, %s1420_s2 }
 0x63c   :  { %v639_v8 = vpop.permute.xlu1 %638 }
 0x644   :  { %v1217_v9 = vpop.permute.xlu1 %1216 }
 0x645   :  { %v1218_v40 = vunpack.i.l.bf16 %v1217_v9  ;;  %v1219_v31 = vunpack.i.h.bf16 %v1217_v9 }
 0x647   :  { %762 = vmatpush.msra.mxu0 %v1218_v40 }
 0x649   :  { %763 = vmatpush.msra.mxu0 %v1219_v31 }
 0x64c   :  { %v1222_v41 = vpop.permute.xlu1 %1221 }
 0x64d   :  { %v1223_v42 = vunpack.i.l.bf16 %v1222_v41  ;;  %v1224_v43 = vunpack.i.h.bf16 %v1222_v41 }
 0x64f   :  { %764 = vmatpush.msra.mxu0 %v1223_v42 }
 0x651   :  { %765 = vmatpush.msra.mxu0 %v1224_v43 }
 0x653   :  { %1076 = vmatpush.msrb.mxu0 %v1590_v56 }
 0x654   :  { %v1227_v25 = vpop.permute.xlu1 %1226 }
 0x655   :  { %1077 = vmatpush.msrb.mxu0 %v1588_v55  ;;  %v1229_v27 = vunpack.i.h.bf16 %v1227_v25 }
 0x657   :  { %1078 = vmatpush.msrb.mxu0 %v1597_v59 }
 0x659   :  { %1079 = vmatpush.msrb.mxu0 %v1595_v58 }
 0x687   :  { %v558_v26 = vpop.xlane.xlu2 %557 }
 0x688   :  { %v562_v30 = vmul.f32 %v558_v26, %v1644_v5 }
 0x68a   :  { %v564_v44 = vadd.f32 1e-12, %v562_v30 }
 0x68c   :  { %1283 = vrsqrt.f32 %v564_v44  ;;  %vm572_vm10 = vweird.f32 %v564_v44 }
 0x68f   :  { %v561_v45 = vpop.xlane.xlu0 %560  ;;  %v589_v23 = vpop.permute.xlu2 %588 }
 0x690   :  { %v563_v47 = vmul.f32 %v561_v45, %v1644_v5 }
 0x692   :  { %v1284_v48 = vpop.eup %1283  ;;  %v565_v49 = vadd.f32 1e-12, %v563_v47 }
 0x693   :  { %v567_v52 = vmul.f32 %v1284_v48, %v564_v44  ;;  %vm573_vm9 = vweird.f32 %v1284_v48 }
 0x694   :  { %1285 = vrsqrt.f32 %v565_v49  ;;  %vm574_vm11 = vmor %vm572_vm10, %vm573_vm9  ;;  %vm582_vm13 = vweird.f32 %v565_v49 }
 0x695   :  { %v568_v53 = vmul.f32 %v1284_v48, %v567_v52 }
 0x697   :  { %v569_v56 = vmul.f32 0.5, %v568_v53  ;;  %v641_v39 = vpop.permute.xlu2 %640 }
 0x699   :  { %v570_v54 = vsub.f32 1.5, %v569_v56 }
 0x69a   :  { %v1286_v55 = vpop.eup %1285 }
 0x69b   :  { %v571_v59 = vmul.f32 %v1284_v48, %v570_v54  ;;  %v577_v58 = vmul.f32 %v1286_v55, %v565_v49  ;;  %vm583_vm12 = vweird.f32 %v1286_v55 }
 0x69c   :  { %vm584_vm14 = vmor %vm582_vm13, %vm583_vm12  ;;  %vm1103_vm12 = vcmask 130048  }
 0x69d   :  { %v575_v57 = vsel %vm574_vm11, %v1284_v48, %v571_v59  ;;  %v578_v22 = vmul.f32 %v1286_v55, %v577_v58 }
 0x69e   :  { %v586_v24 = vmul.f32 %v575_v57, %v552_v32 }
 0x69f   :  { %v579_v29 = vmul.f32 0.5, %v578_v22 }
 0x6a0   :  { %v591_v35 = vmul.f32 %v589_v23, %v586_v24 }
 0x6a1   :  { %v580_v50 = vsub.f32 1.5, %v579_v29 }
 0x6a2   :  { %v1212_v6 = vpop.permute.xlu0 %1211  ;;  %v1733_v36 = vadd.f32 %v593_v60, %v591_v35 }
 0x6a3   :  { %v581_v7 = vmul.f32 %v1286_v55, %v580_v50  ;;  %v1213_v20 = vunpack.i.l.bf16 %v1212_v6  ;;  %v1214_v28 = vunpack.i.h.bf16 %v1212_v6  ;;  %v1232_v50 = vpop.permute.xlu1 %1231 }
 0x6a4   :  { %v1233_v35 = vunpack.i.l.bf16 %v1232_v50 }
 0x6a5   :  { %v585_v34 = vsel %vm584_vm14, %v1286_v55, %v581_v7  ;;  %629 = vmatpush.msrb.mxu1 %v1213_v20 }
 0x6a6   :  { %v587_v38 = vmul.f32 %v585_v34, %v1712_v37  ;;  %v1746_v37 = vperm.slane %v1524_v14, 4 }
 0x6a7   :  { %630 = vmatpush.msrb.mxu1 %v1214_v28 }
 0x6a8   :  { %1137 = vmatmul.msk.f32.vlgmr.msrb.gmra.mxu1 %vm101_vm0, %v1733_v36  ;;  %v592_v33 = vmul.f32 %v589_v23, %v587_v38  ;;  %786 = vrot.lane.b32.xlu1 %v1746_v37, %s1418_s18  ;;  %v1228_v23 = vunpack.i.l.bf16 %v1227_v25 }
 0x6aa   :  { %v643_v32 = vpop.permute.xlu0 %642  ;;  %v1739_v9 = vadd.f32 %v593_v60, %v592_v33  ;;  %807 = vmatpush.msra.mxu1 %v1228_v23  ;;  %v1234_v60 = vunpack.i.h.bf16 %v1232_v50 }
 0x6ab   :  { %1140 = vmatpush.xpose.msk.msra.mxu3 %vm101_vm0, %v643_v32 }
 0x6ac   :  { %808 = vmatpush.msra.mxu1 %v1229_v27 }
 0x6ae   :  { %809 = vmatpush.msra.mxu1 %v1233_v35 }
 0x6af   :  { %1141 = vmatpush.xpose.msk.msra.mxu3 %vm101_vm0, %v641_v39 }
 0x6b0   :  { %1138 = vmatmul.msk.f32.gmra.mxu1 %vm101_vm0, %v1739_v9 }
 0x6b1   :  { %810 = vmatpush.msra.mxu1 %v1234_v60 }
 0x6b3   :  { %1142 = vmatpush.xpose.msk.msra.mxu3 %vm101_vm0, %v639_v8 }
 0x71a   :  { %v787_v20 = vpop.permute.xlu1 %786 }
 0x725   :  { %v632_v40 = vpop.f32.mrf.mxu1 }
 0x726   :  { %v633_v31 = vadd.f32 %v632_v40, %v1746_v37 }
 0x728   :  { %1143 = vmatmul.msk.f32.vlgmr.msra.gmra.mxu3 %vm101_vm0, %v633_v31 }
 0x72d   :  { %v635_v41 = vpop.f32.mrf.mxu1 }
 0x72e   :  { %v636_v42 = vadd.f32 %v635_v41, %v1746_v37 }
 0x730   :  { %1144 = vmatmul.msk.f32.gmra.mxu3 %vm101_vm0, %v636_v42 }
 0x7ab   :  { %v677_v43 = vpop.f32.mrf.mxu3 }
 0x7ac   :  { %v683_v26 = vmul.f32 0.35355338, %v677_v43  ;;  %v1812_v43 = vperm.slane %v1524_v14, 5 }
 0x7ae   :  { %v685_v30 = vadd.f32 %v683_v26, %v1577_v46 }
 0x7b0   :  { %v687_v44 = vsel %vm101_vm0, %v685_v30, -inf }
 0x7b1   :  { %688 = vmax.xlane.f32.xlu0 %v687_v44 }
 0x7b3   :  { %v680_v8 = vpop.f32.mrf.mxu3 }
 0x7b4   :  { %v684_v45 = vmul.f32 0.35355338, %v680_v8 }
 0x7b6   :  { %v686_v47 = vadd.f32 %v684_v45, %v1584_v51 }
 0x7b8   :  { %v690_v48 = vsel %vm101_vm0, %v686_v47, -inf }
 0x7b9   :  { %691 = vmax.xlane.f32.xlu2 %v690_v48 }
 0x824   :  { %v689_v49 = vpop.xlane.xlu0 %688 }
 0x825   :  { %v693_v52 = vsub.f32 %v685_v30, %v689_v49 }
 0x827   :  { %v695_v53 = vmul.f32 1.442695, %v693_v52 }
 0x829   :  { %1287 = vpow2.f32 %v695_v53 }
 0x82c   :  { %v692_v56 = vpop.xlane.xlu2 %691 }
 0x82d   :  { %v694_v54 = vsub.f32 %v686_v47, %v692_v56 }
 0x82f   :  { %v1288_v55 = vpop.eup %1287  ;;  %v697_v59 = vmul.f32 1.442695, %v694_v54 }
 0x830   :  { %1145 = vmatmul.msk.f32.vlgmr.msra.gmra.mxu2 %vm101_vm0, %v1288_v55 }
 0x831   :  { %1289 = vpow2.f32 %v697_v59 }
 0x837   :  { %v1290_v46 = vpop.eup %1289 }
 0x838   :  { %1146 = vmatmul.msk.f32.gmra.mxu2 %vm101_vm0, %v1290_v46 }
 0x8b3   :  { %v722_v51 = vpop.f32.mrf.mxu2 }
 0x8b4   :  { %1291 = vrcp.f32 %v722_v51 }
 0x8ba   :  { %v1292_v58 = vpop.eup %1291 }
 0x8bb   :  { %v1764_v57 = vmul.f32 %v1292_v58, %v1288_v55  ;;  %v725_v22 = vpop.f32.mrf.mxu2 }
 0x8bc   :  { %1293 = vrcp.f32 %v725_v22 }
 0x8bd   :  { %1147 = vmatmul.msk.f32.vlgmr.msra.gmra.mxu0 %vm101_vm0, %v1764_v57 }
 0x8c2   :  { %v1294_v24 = vpop.eup %1293 }
 0x8c3   :  { %v1768_v29 = vmul.f32 %v1294_v24, %v1290_v46 }
 0x8c5   :  { %1148 = vmatmul.msk.f32.gmra.mxu0 %vm101_vm0, %v1768_v29 }
 0x93a   :  { %v767_v6 = vpop.f32.mrf.mxu0 }
 0x93b   :  { %1149 = vmatmul.msk.f32.vlgmr.msra.gmra.mxu1 %vm101_vm0, %v767_v6 }
 0x942   :  { %v770_v7 = vpop.f32.mrf.mxu0 }
 0x943   :  { %1150 = vmatmul.msk.f32.gmra.mxu1 %vm101_vm0, %v770_v7 }
 0x9b8   :  { %v812_v34 = vpop.f32.mrf.mxu1 }
 0x9b9   :  { %v813_v28 = vadd.f32 %v812_v34, %v787_v20 }
 0x9bb   :  { %v818_v38 = vadd.f32 %v813_v28, %v1733_v36 }
 0x9bd   :  { %v820_v32 = vsel %vm101_vm0, %v818_v38, 0.0 }
 0x9be   :  { %821 = vadd.xlane.f32.xlu0 %v820_v32 }
 0x9c0   :  { %v815_v33 = vpop.f32.mrf.mxu1 }
 0x9c1   :  { %v816_v39 = vadd.f32 %v815_v33, %v787_v20 }
 0x9c3   :  { %v819_v40 = vadd.f32 %v816_v39, %v1739_v9 }
 0x9c5   :  { %v823_v31 = vsel %vm101_vm0, %v819_v40, 0.0 }
 0x9c6   :  { %824 = vadd.xlane.f32.xlu2 %v823_v31 }
 0x9d2   :  { %864 = vrot.lane.b32.xlu0 %v1746_v37, %s1420_s2 }
 0x9de   :  { %1236 = vrot.lane.b32.xlu2 %v1235_v63, %s1420_s2 }
 0x9e6   :  { %1241 = vrot.lane.b32.xlu2 %v1240_v2, %s1420_s2 }
 0x9ee   :  { %1246 = vrot.lane.b32.xlu2 %v1245_v12, %s1418_s18 }
 0x9f6   :  { %1261 = vrot.lane.b32.xlu2 %v1260_v21, %s1418_s18 }
 0xa31   :  { %v822_v36 = vpop.xlane.xlu0 %821 }
 0xa32   :  { %v826_v9 = vmul.f32 %v822_v36, %v1644_v5 }
 0xa34   :  { %v828_v61 = vsub.f32 %v818_v38, %v826_v9 }
 0xa36   :  { %v830_v62 = vmul.f32 %v828_v61, %v828_v61 }
 0xa38   :  { %v832_v63 = vsel %vm101_vm0, %v830_v62, 0.0 }
 0xa39   :  { %833 = vadd.xlane.f32.xlu1 %v832_v63  ;;  %v825_v0 = vpop.xlane.xlu2 %824 }
 0xa3a   :  { %v827_v1 = vmul.f32 %v825_v0, %v1644_v5 }
 0xa3c   :  { %v829_v2 = vsub.f32 %v819_v40, %v827_v1 }
 0xa3e   :  { %v831_v41 = vmul.f32 %v829_v2, %v829_v2 }
 0xa40   :  { %v835_v3 = vsel %vm101_vm0, %v831_v41, 0.0 }
 0xa41   :  { %836 = vadd.xlane.f32.xlu0 %v835_v3  ;;  %v1237_v4 = vpop.permute.xlu2 %1236 }
 0xa42   :  { %v1238_v12 = vunpack.i.l.bf16 %v1237_v4  ;;  %v1239_v18 = vunpack.i.h.bf16 %v1237_v4 }
 0xa44   :  { %909 = vmatpush.msrb.mxu3 %v1238_v12  ;;  %v865_v15 = vpop.permute.xlu0 %864 }
 0xa46   :  { %910 = vmatpush.msrb.mxu3 %v1239_v18 }
 0xa49   :  { %v1242_v19 = vpop.permute.xlu2 %1241 }
 0xa4a   :  { %v1243_v21 = vunpack.i.l.bf16 %v1242_v19  ;;  %v1244_v42 = vunpack.i.h.bf16 %v1242_v19 }
 0xa4c   :  { %911 = vmatpush.msrb.mxu3 %v1243_v21 }
 0xa4e   :  { %912 = vmatpush.msrb.mxu3 %v1244_v42 }
 0xa51   :  { %v1247_v27 = vpop.permute.xlu2 %1246 }
 0xa52   :  { %1256 = vrot.lane.b32.xlu1 %v1255_v17, %s1418_s18  ;;  %v1248_v23 = vunpack.i.l.bf16 %v1247_v27  ;;  %v1249_v50 = vunpack.i.h.bf16 %v1247_v27 }
 0xa54   :  { %988 = vmatpush.msrb.mxu2 %v1248_v23 }
 0xa55   :  { %869 = vrot.lane.b32.xlu0 %v1746_v37, %s1422_s23 }
 0xa56   :  { %989 = vmatpush.msrb.mxu2 %v1249_v50 }
 0xa59   :  { %v1262_v28 = vpop.permute.xlu2 %1261 }
 0xa5a   :  { %v1263_v38 = vunpack.i.l.bf16 %v1262_v28  ;;  %v1264_v32 = vunpack.i.h.bf16 %v1262_v28  ;;  %v1307_v28 = vld [vmem:[#allocation7] sm:$0xff] }
 0xa5d   :  { %1251 = vrot.lane.b32.xlu0 %v1250_v13, %s1418_s18 }
 0xa65   :  { %971 = vrot.lane.b32.xlu0 %v1812_v43, %s1420_s2 }
 0xaac   :  { %v834_v16 = vpop.xlane.xlu1 %833 }
 0xaad   :  { %v838_v17 = vmul.f32 %v834_v16, %v1644_v5 }
 0xaaf   :  { %v840_v37 = vadd.f32 1e-12, %v838_v17 }
 0xab1   :  { %1295 = vrsqrt.f32 %v840_v37  ;;  %vm848_vm1 = vweird.f32 %v840_v37 }
 0xab4   :  { %v837_v11 = vpop.xlane.xlu0 %836 }
 0xab5   :  { %v839_v10 = vmul.f32 %v837_v11, %v1644_v5 }
 0xab7   :  { %v1296_v13 = vpop.eup %1295  ;;  %v841_v26 = vadd.f32 1e-12, %v839_v10 }
 0xab8   :  { %v843_v30 = vmul.f32 %v1296_v13, %v840_v37  ;;  %vm849_vm15 = vweird.f32 %v1296_v13 }
 0xab9   :  { %1297 = vrsqrt.f32 %v841_v26  ;;  %vm850_vm2 = vmor %vm848_vm1, %vm849_vm15  ;;  %vm858_vm4 = vweird.f32 %v841_v26 }
 0xaba   :  { %v844_v44 = vmul.f32 %v1296_v13, %v843_v30 }
 0xabc   :  { %v845_v8 = vmul.f32 0.5, %v844_v44 }
 0xabe   :  { %v846_v45 = vsub.f32 1.5, %v845_v8 }
 0xabf   :  { %v1298_v47 = vpop.eup %1297 }
 0xac0   :  { %v847_v48 = vmul.f32 %v1296_v13, %v846_v45  ;;  %v853_v49 = vmul.f32 %v1298_v47, %v841_v26  ;;  %vm859_vm3 = vweird.f32 %v1298_v47 }
 0xac1   :  { %vm860_vm5 = vmor %vm858_vm4, %vm859_vm3 }
 0xac2   :  { %v854_v14 = vmul.f32 %v1298_v47, %v853_v49  ;;  %v851_v52 = vsel %vm850_vm2, %v1296_v13, %v847_v48 }
 0xac3   :  { %v862_v53 = vmul.f32 %v851_v52, %v828_v61 }
 0xac4   :  { %v855_v56 = vmul.f32 0.5, %v854_v14  ;;  %v1257_v7 = vpop.permute.xlu1 %1256 }
 0xac5   :  { %v867_v54 = vmul.f32 %v865_v15, %v862_v53  ;;  %v1258_v20 = vunpack.i.l.bf16 %v1257_v7  ;;  %v1259_v34 = vunpack.i.h.bf16 %v1257_v7 }
 0xac6   :  { %v856_v55 = vsub.f32 1.5, %v855_v56 }
 0xac7   :  { %v870_v59 = vpop.permute.xlu0 %869 }
 0xac8   :  { %v857_v46 = vmul.f32 %v1298_v47, %v856_v55  ;;  %v872_v51 = vadd.f32 %v870_v59, %v867_v54 }
 0xaca   :  { %v861_v58 = vsel %vm860_vm5, %v1298_v47, %v857_v46  ;;  %1151 = vmatmul.msk.f32.vlgmr.msrb.gmra.mxu3 %vm101_vm0, %v872_v51 }
 0xacb   :  { %v863_v22 = vmul.f32 %v861_v58, %v829_v2 }
 0xacd   :  { %v868_v24 = vmul.f32 %v865_v15, %v863_v22 }
 0xacf   :  { %v873_v25 = vadd.f32 %v870_v59, %v868_v24  ;;  %v1252_v60 = vpop.permute.xlu0 %1251 }
 0xad0   :  { %v1253_v35 = vunpack.i.l.bf16 %v1252_v60  ;;  %v1254_v6 = vunpack.i.h.bf16 %v1252_v60 }
 0xad2   :  { %1152 = vmatmul.msk.f32.gmra.mxu3 %vm101_vm0, %v873_v25  ;;  %990 = vmatpush.msrb.mxu2 %v1253_v35 }
 0xad4   :  { %991 = vmatpush.msrb.mxu2 %v1254_v6 }
 0xad6   :  { %992 = vmatpush.msrb.mxu2 %v1258_v20 }
 0xad7   :  { %v972_v17 = vpop.permute.xlu0 %971 }
 0xad8   :  { %993 = vmatpush.msrb.mxu2 %v1259_v34 }
 0xada   :  { %994 = vmatpush.msrb.mxu2 %v1263_v38  ;;  %v1054_v38 = vperm.slane %v1307_v28, 6 }
 0xadc   :  { %995 = vmatpush.msrb.mxu2 %v1264_v32 }
 0xb4d   :  { %v914_v33 = vpop.f32.mrf.mxu3 }
 0xb4e   :  { %v915_v39 = vadd.f32 %v914_v33, %v1812_v43 }
 0xb50   :  { %v920_v40 = vmul.f32 %v915_v39, %v915_v39 }
 0xb52   :  { %v922_v31 = vmul.f32 %v920_v40, %v915_v39 }
 0xb54   :  { %v924_v36 = vmul.f32 0.044715, %v922_v31 }
 0xb55   :  { %v917_v9 = vpop.f32.mrf.mxu3 }
 0xb56   :  { %v926_v61 = vadd.f32 %v924_v36, %v915_v39  ;;  %v918_v62 = vadd.f32 %v917_v9, %v1812_v43 }
 0xb58   :  { %v928_v63 = vmul.f32 0.7978846, %v926_v61  ;;  %v921_v0 = vmul.f32 %v918_v62, %v918_v62 }
 0xb5a   :  { %1299 = vtanh.f32 %v928_v63  ;;  %v923_v1 = vmul.f32 %v921_v0, %v918_v62  ;;  %v1057_v63 = vperm.slane %v1307_v28, 7 }
 0xb5c   :  { %v925_v2 = vmul.f32 0.044715, %v923_v1 }
 0xb5e   :  { %v927_v41 = vadd.f32 %v925_v2, %v918_v62 }
 0xb60   :  { %v1300_v3 = vpop.eup %1299  ;;  %v929_v4 = vmul.f32 0.7978846, %v927_v41 }
 0xb61   :  { %v932_v12 = vadd.f32 1.0, %v1300_v3 }
 0xb62   :  { %1301 = vtanh.f32 %v929_v4 }
 0xb63   :  { %v934_v18 = vmul.f32 0.5, %v932_v12 }
 0xb65   :  { %v936_v19 = vmul.f32 %v934_v18, %v915_v39 }
 0xb67   :  { %1153 = vmatmul.msk.f32.vlgmr.msrb.gmra.mxu2 %vm512_vm8, %v936_v19 }
 0xb68   :  { %v1302_v21 = vpop.eup %1301 }
 0xb69   :  { %v933_v42 = vadd.f32 1.0, %v1302_v21 }
 0xb6b   :  { %v935_v15 = vmul.f32 0.5, %v933_v42 }
 0xb6d   :  { %v937_v16 = vmul.f32 %v935_v15, %v918_v62 }
 0xb6f   :  { %1154 = vmatmul.msk.f32.gmra.mxu2 %vm512_vm8, %v937_v16 }
 0xbea   :  { %v997_v37 = vpop.f32.mrf.mxu2 }
 0xbeb   :  { %v998_v11 = vadd.f32 %v997_v37, %v972_v17 }
 0xbed   :  { %v1003_v10 = vadd.f32 %v998_v11, %v872_v51 }
 0xbef   :  { %v1005_v13 = vsel %vm101_vm0, %v1003_v10, 0.0 }
 0xbf0   :  { %1006 = vadd.xlane.f32.xlu2 %v1005_v13 }
 0xbf2   :  { %v1000_v26 = vpop.f32.mrf.mxu2 }
 0xbf3   :  { %v1001_v30 = vadd.f32 %v1000_v26, %v972_v17 }
 0xbf5   :  { %v1004_v44 = vadd.f32 %v1001_v30, %v873_v25 }
 0xbf7   :  { %v1008_v8 = vsel %vm101_vm0, %v1004_v44, 0.0 }
 0xbf8   :  { %1009 = vadd.xlane.f32.xlu0 %v1008_v8 }
 0xc0c   :  { %1049 = vrot.lane.b32.xlu0 %v1812_v43, %s1422_s23 }
 0xc63   :  { %v1007_v45 = vpop.xlane.xlu2 %1006 }
 0xc64   :  { %v1011_v47 = vmul.f32 %v1007_v45, %v1644_v5 }
 0xc66   :  { %v1013_v48 = vsub.f32 %v1003_v10, %v1011_v47 }
 0xc68   :  { %v1015_v49 = vmul.f32 %v1013_v48, %v1013_v48 }
 0xc6a   :  { %v1017_v14 = vsel %vm101_vm0, %v1015_v49, 0.0 }
 0xc6b   :  { %v1010_v52 = vpop.xlane.xlu0 %1009  ;;  %1018 = vadd.xlane.f32.xlu1 %v1017_v14 }
 0xc6c   :  { %v1012_v53 = vmul.f32 %v1010_v52, %v1644_v5 }
 0xc6e   :  { %v1014_v56 = vsub.f32 %v1004_v44, %v1012_v53 }
 0xc70   :  { %v1016_v54 = vmul.f32 %v1014_v56, %v1014_v56 }
 0xc72   :  { %v1020_v55 = vsel %vm101_vm0, %v1016_v54, 0.0 }
 0xc73   :  { %1021 = vadd.xlane.f32.xlu2 %v1020_v55 }
 0xc7e   :  { %v1050_v20 = vpop.permute.xlu0 %1049 }
 0xc84   :  { %1089 = vrot.lane.b32.xlu1 %v1768_v29, %s1419_s5 }
 0xc8b   :  { %1087 = vrot.lane.b32.xlu2 %v1764_v57, %s1419_s5 }
 0xcde   :  { %v1019_v43 = vpop.xlane.xlu1 %1018 }
 0xcdf   :  { %v1023_v59 = vmul.f32 %v1019_v43, %v1644_v5 }
 0xce1   :  { %v1025_v46 = vadd.f32 1e-12, %v1023_v59 }
 0xce3   :  { %1303 = vrsqrt.f32 %v1025_v46  ;;  %vm1033_vm7 = vweird.f32 %v1025_v46 }
 0xce6   :  { %v1022_v51 = vpop.xlane.xlu2 %1021 }
 0xce7   :  { %v1024_v58 = vmul.f32 %v1022_v51, %v1644_v5 }
 0xce9   :  { %v1304_v22 = vpop.eup %1303  ;;  %v1026_v24 = vadd.f32 1e-12, %v1024_v58 }
 0xcea   :  { %v1028_v25 = vmul.f32 %v1304_v22, %v1025_v46  ;;  %vm1034_vm6 = vweird.f32 %v1304_v22 }
 0xceb   :  { %1305 = vrsqrt.f32 %v1026_v24  ;;  %vm1035_vm8 = vmor %vm1033_vm7, %vm1034_vm6  ;;  %vm1043_vm10 = vweird.f32 %v1026_v24 }
 0xcec   :  { %v1029_v27 = vmul.f32 %v1304_v22, %v1028_v25 }
 0xcee   :  { %v1030_v23 = vmul.f32 0.5, %v1029_v27  ;;  %v1088_v3 = vpop.permute.xlu2 %1087 }
 0xcef   :  { %v1093_v4 = vadd.f32 %v1088_v3, %v1764_v57 }
 0xcf0   :  { %v1031_v50 = vsub.f32 1.5, %v1030_v23 }
 0xcf1   :  { %v1306_v60 = vpop.eup %1305 }
 0xcf2   :  { %v1038_v35 = vmul.f32 %v1306_v60, %v1026_v24  ;;  %v1032_v6 = vmul.f32 %v1304_v22, %v1031_v50  ;;  %vm1044_vm9 = vweird.f32 %v1306_v60 }
 0xcf3   :  { %vm1045_vm11 = vmor %vm1043_vm10, %vm1044_vm9 }
 0xcf4   :  { %v1039_v7 = vmul.f32 %v1306_v60, %v1038_v35  ;;  %v1036_v34 = vsel %vm1035_vm8, %v1304_v22, %v1032_v6 }
 0xcf5   :  { %v1047_v32 = vmul.f32 %v1036_v34, %v1013_v48 }
 0xcf6   :  { %v1040_v5 = vmul.f32 0.5, %v1039_v7  ;;  %v1090_v19 = vpop.permute.xlu1 %1089 }
 0xcf7   :  { %v1052_v33 = vmul.f32 %v1050_v20, %v1047_v32  ;;  %v1094_v21 = vadd.f32 %v1090_v19, %v1768_v29 }
 0xcf8   :  { %v1041_v39 = vsub.f32 1.5, %v1040_v5 }
 0xcf9   :  { %v1055_v40 = vadd.f32 %v1054_v38, %v1052_v33 }
 0xcfa   :  { %v1042_v31 = vmul.f32 %v1306_v60, %v1041_v39 }
 0xcfb   :  { %1155 = vmatmul.msk.f32.vlgmr.msrb.gmra.mxu0 %vm101_vm0, %v1055_v40 }
 0xcfc   :  { %v1046_v36 = vsel %vm1045_vm11, %v1306_v60, %v1042_v31 }
 0xcfd   :  { %v1048_v9 = vmul.f32 %v1046_v36, %v1014_v56 }
 0xcff   :  { %v1053_v61 = vmul.f32 %v1050_v20, %v1048_v9 }
 0xd01   :  { %v1056_v62 = vadd.f32 %v1054_v38, %v1053_v61 }
 0xd03   :  { %1156 = vmatmul.msk.f32.gmra.mxu0 %vm101_vm0, %v1056_v62 }
 0xd78   :  { %v1081_v0 = vpop.f32.mrf.mxu0 }
 0xd79   :  { %v1082_v1 = vadd.f32 %v1081_v0, %v1057_v63 }
 0xd7b   :  { %1097 = vrot.lane.b32.xlu0 %v1082_v1, %s1423_s24 }
 0xd80   :  { %v1084_v2 = vpop.f32.mrf.mxu0 }
 0xd81   :  { %v1085_v41 = vadd.f32 %v1084_v2, %v1057_v63 }
 0xd83   :  { %1099 = vrot.lane.b32.xlu0 %v1085_v41, %s1423_s24 }
 0xded   :  { %v1098_v12 = vpop.permute.xlu0 %1097 }
 0xdee   :  { %v1104_v18 = vsel %vm1103_vm12, %v1093_v4, %v1098_v12 }
 0xdef   :  { %1106 = vst.msk [vmem:[%s1856_s7] sm:$0xff] %vm101_vm0, %v1104_v18 }
 0xdf5   :  { %v1100_v42 = vpop.permute.xlu0 %1099 }
 0xdf6   :  { %v1105_v15 = vsel %vm1103_vm12, %v1094_v21, %v1100_v42 }
 0xdf7   :  { %1107 = vst.msk [vmem:[%s1856_s7 + $0x8] sm:$0xff] %vm101_vm0, %v1105_v15 }
 0xdf8   :  { %1112 = vsyncpa [#allocation3], 1 }
 0xdf9   :  { %1113 = vsyncpa [#allocation5], 1 }
 0xdfa   :  { %1114 = vsyncpa [#allocation8], 1 }

</bundles_post_ra>
